<compile_context>
chip_gen: v5e
topology: v5e:2x2
jax: 0.10.0
libtpu: 0.0.40
codegen_flags: <defaults>
</compile_context>

<pallas_src>
import math

import jax
import jax.numpy as jnp
from jax import lax
from jax.experimental import pallas as pl
from jax.experimental.pallas import tpu as pltpu

# ----------------------------- model config (small) --------------------------
VOCAB = 65
N_EMBED = 32
NUM_HEADS = 4
HEAD_SIZE = N_EMBED // NUM_HEADS
N_LAYER = 2
MAX_SEQ = 16
B = 2
T = 8
EPS = 1e-5                       # nn.LayerNorm default
VOCAB_PAD = 128                  # lane-dense LM-head width (65 -> 128)
NEG_INF = -1e30                  # finite mask value (NaN-safe)
SCALE = 1.0 / math.sqrt(HEAD_SIZE)

# packed small-vector slab layout (one 128-lane row per vector)
VEC_ROWS_PER_LAYER = 7           # ln1_g, ln1_b, bproj, ln2_g, ln2_b, b1, b2
N_VEC_ROWS = VEC_ROWS_PER_LAYER * N_LAYER + 3    # + lnf_g, lnf_b, blm
VEC_SLAB_ROWS = ((N_VEC_ROWS + 7) // 8) * 8      # pad rows to a sublane multiple


def _layernorm(x, gamma, beta):
    """LayerNorm over the last dim (biased variance, like nn.LayerNorm). f32."""
    mu = jnp.mean(x, axis=-1, keepdims=True)
    var = jnp.mean((x - mu) ** 2, axis=-1, keepdims=True)
    return (x - mu) * lax.rsqrt(var + EPS) * gamma + beta


def _bf16(x):
    return x.astype(jnp.bfloat16)


# ------------------------------ fused Pallas kernel ---------------------------
def char_gpt_kernel(x_ref, wbig_ref, w2_ref, wlm_ref, vec_ref, out_ref):
    """One batch element's full forward: 2 transformer blocks -> LN_f -> LM head.

    Shapes (per grid program; C = n_embed, H = heads, hs = C//H, VP = 128):
      x_ref:    (T, C)   f32   token+position embeddings for one sequence
      wbig_ref: (L, C, 8C) bf16  per-layer [Wqkv | Wproj | W1] concat on last dim
      w2_ref:   (L, 4C, C) bf16
      wlm_ref:  (C, VP)  bf16   vocab padded to 128 lanes
      vec_ref:  (rows, 128) f32 packed gains/biases (one vector per row)
      out_ref:  (T, VP)  f32
    """
    T_loc, C = x_ref.shape
    H, hs = NUM_HEADS, HEAD_SIZE
    rows = H * T_loc

    x = x_ref[...]                          # (T, C) f32
    vecs = vec_ref[...]                     # (rows, 128) f32

    def vrow(i, width):                     # static row / lane slice of the slab
        return vecs[i:i + 1, :width]        # (1, width) -> broadcasts over rows

    # ---- masks generated in-kernel (no operands, VPU is idle) ----
    # head-column selector: head h owns columns [h*hs, (h+1)*hs)
    h_idx = lax.broadcasted_iota(jnp.int32, (H, 1, C), 0)
    c_idx = lax.broadcasted_iota(jnp.int32, (H, 1, C), 2)
    hsel = (c_idx >= h_idx * hs) & (c_idx < (h_idx + 1) * hs)
    hm_q = jnp.where(hsel, SCALE, 0.0)      # 1/sqrt(hs) score scale folded in
    hm_o = jnp.where(hsel, 1.0, 0.0)
    # causal mask for head-stacked score rows (row = h*T + t, col = t2)
    q_t = lax.broadcasted_iota(jnp.int32, (rows, T_loc), 0) % T_loc
    k_t = lax.broadcasted_iota(jnp.int32, (rows, T_loc), 1)
    causal = k_t <= q_t

    for l in range(N_LAYER):                # static unroll; weights stay in VMEM
        base = l * VEC_ROWS_PER_LAYER
        ln1_g, ln1_b = vrow(base + 0, C), vrow(base + 1, C)
        bproj = vrow(base + 2, C)
        ln2_g, ln2_b = vrow(base + 3, C), vrow(base + 4, C)
        b1, b2 = vrow(base + 5, 4 * C), vrow(base + 6, C)

        wl = wbig_ref[l]                    # (C, 8C) bf16
        wqkv = wl[:, :3 * C]
        wproj = wl[:, 3 * C:4 * C]
        w1 = wl[:, 4 * C:]
        w2 = w2_ref[l]                      # (4C, C) bf16

        # ---- x = x + SelfAttention(LN1(x)) ----
        h = _layernorm(x, ln1_g, ln1_b)
        qkv = jnp.dot(_bf16(h), wqkv, preferred_element_type=jnp.float32)  # (T,3C)
        q, k, v = qkv[:, :C], qkv[:, C:2 * C], qkv[:, 2 * C:]

        # heads stacked along rows: row h*T+t keeps only head-h columns of q[t]
        # (already multiplied by the score scale), so ONE 2-D matmul does all heads.
        qbd = (q[None, :, :] * hm_q).reshape(rows, C)
        s = lax.dot_general(_bf16(qbd), _bf16(k),
                            (((1,), (1,)), ((), ())),        # contract last dims
                            preferred_element_type=jnp.float32)   # (H*T, T)
        s = jnp.where(causal, s, NEG_INF)
        s = s - jnp.max(s, axis=-1, keepdims=True)
        p = jnp.exp(s)
        p = p * pl.reciprocal(jnp.sum(p, axis=-1, keepdims=True), approx=True)

        o = jnp.dot(_bf16(p), _bf16(v), preferred_element_type=jnp.float32)  # (H*T,C)
        att = jnp.sum(o.reshape(H, T_loc, C) * hm_o, axis=0)     # merge heads (T,C)
        att = jnp.dot(_bf16(att), wproj,
                      preferred_element_type=jnp.float32) + bproj
        x = x + att

        # ---- x = x + FFN(LN2(x)) ----
        h2 = _layernorm(x, ln2_g, ln2_b)
        f = jnp.dot(_bf16(h2), w1, preferred_element_type=jnp.float32) + b1
        f = jnp.maximum(f, 0.0)
        f = jnp.dot(_bf16(f), w2, preferred_element_type=jnp.float32) + b2
        x = x + f

    # ---- final LayerNorm + lane-dense LM head (single full-lane store) ----
    fb = N_LAYER * VEC_ROWS_PER_LAYER
    hf = _layernorm(x, vrow(fb, C), vrow(fb + 1, C))
    out_ref[...] = jnp.dot(_bf16(hf), wlm_ref[...],
                           preferred_element_type=jnp.float32) + vrow(fb + 2, VOCAB_PAD)


# ------------------------------- forward wrapper ------------------------------
def char_gpt_forward(packed, idx):
    """idx: (B, T) int32 token ids -> logits (B, T, VOCAB).
    Single fused Pallas call; only the embedding gather (+pos add) is XLA glue."""
    bsz, seq = idx.shape
    C = N_EMBED

    # pos-emb add folded into the embedding gather (one fused XLA op, no tile).
    x = (jnp.take(packed["tok_emb"], idx, axis=0)
         + packed["pos_emb"][:seq][None]).reshape(bsz * seq, C).astype(jnp.float32)

    logits = pl.pallas_call(
        char_gpt_kernel,
        out_shape=jax.ShapeDtypeStruct((bsz * seq, VOCAB_PAD), jnp.float32),
        grid=(bsz,),                                   # batch-parallel (v7x: 2 TCs)
        in_specs=[
            pl.BlockSpec((seq, C), lambda b: (b, 0)),                  # activations
            pl.BlockSpec((N_LAYER, C, 8 * C), lambda b: (0, 0, 0)),    # wqkv|wproj|w1
            pl.BlockSpec((N_LAYER, 4 * C, C), lambda b: (0, 0, 0)),    # w2
            pl.BlockSpec((C, VOCAB_PAD), lambda b: (0, 0)),            # lm head
            pl.BlockSpec((VEC_SLAB_ROWS, 128), lambda b: (0, 0)),      # bias/gain slab
        ],
        out_specs=pl.BlockSpec((seq, VOCAB_PAD), lambda b: (b, 0)),
        compiler_params=pltpu.CompilerParams(dimension_semantics=("parallel",)),
    )(x, packed["wbig"], packed["w2"], packed["wlm"], packed["vecs"])

    return logits.reshape(bsz, seq, VOCAB_PAD)[:, :, :VOCAB]


# --------------------------- one-time parameter packing -------------------------
def pack_params(p):
    """Hoisted, per-model (not per-call) prep: weight concat + bf16 cast, LM-head
    lane padding, and packing of all small vectors into one (rows, 128) slab."""
    L, C = N_LAYER, N_EMBED

    wbig = jnp.concatenate([p["wqkv"], p["wproj"], p["w1"]], axis=2)     # (L,C,8C)
    wlm = jnp.pad(p["w_lm"], ((0, 0), (0, VOCAB_PAD - VOCAB)))           # (C,128)
    blm = jnp.pad(p["b_lm"], ((0, 0), (0, VOCAB_PAD - VOCAB)))           # (1,128)

    def pad128(v):                                   # (1, n) -> (1, 128)
        return jnp.pad(v, ((0, 0), (0, 128 - v.shape[-1])))

    rows = []
    for l in range(L):
        rows += [pad128(p["ln1_g"][l]), pad128(p["ln1_b"][l]), pad128(p["bproj"][l]),
                 pad128(p["ln2_g"][l]), pad128(p["ln2_b"][l]),
                 pad128(p["b1"][l]), pad128(p["b2"][l])]
    rows += [pad128(p["lnf_g"]), pad128(p["lnf_b"]), blm]
    vecs = jnp.concatenate(rows, axis=0)                                 # (17,128)
    vecs = jnp.pad(vecs, ((0, VEC_SLAB_ROWS - vecs.shape[0]), (0, 0)))   # (24,128)

    return {
        "tok_emb": p["tok_emb"].astype(jnp.float32),
        "pos_emb": p["pos_emb"].astype(jnp.float32),
        "wbig": wbig.astype(jnp.bfloat16),       # bf16 weight stacks: MXU-native,
        "w2": p["w2"].astype(jnp.bfloat16),      # half the HBM->VMEM bytes
        "wlm": wlm.astype(jnp.bfloat16),
        "vecs": vecs.astype(jnp.float32),        # vector-path work stays f32 (v5e)
    }


# ------------------------------- parameter init --------------------------------
def init_params(key):
    std = 0.02
    ks = jax.random.split(key, 7)
    # round weights through bf16 so the kernel's bf16 weight stacks are lossless
    # w.r.t. the f32 reference parameters.
    nrm = lambda k, s: (jax.random.normal(k, s, jnp.float32) * std
                        ).astype(jnp.bfloat16).astype(jnp.float32)
    L, C, H4 = N_LAYER, N_EMBED, 4 * N_EMBED
    return {
        "tok_emb": nrm(ks[0], (VOCAB, C)),
        "pos_emb": nrm(ks[1], (MAX_SEQ, C)),
        "ln1_g": jnp.ones((L, 1, C), jnp.float32),
        "ln1_b": jnp.zeros((L, 1, C), jnp.float32),
        "wqkv": nrm(ks[2], (L, C, 3 * C)),     # fused [Wq | Wk | Wv], bias-free
        "wproj": nrm(ks[3], (L, C, C)),
        "bproj": jnp.zeros((L, 1, C), jnp.float32),
        "ln2_g": jnp.ones((L, 1, C), jnp.float32),
        "ln2_b": jnp.zeros((L, 1, C), jnp.float32),
        "w1": nrm(ks[4], (L, C, H4)),
        "b1": jnp.zeros((L, 1, H4), jnp.float32),
        "w2": nrm(ks[5], (L, H4, C)),
        "b2": jnp.zeros((L, 1, C), jnp.float32),
        "lnf_g": jnp.ones((1, C), jnp.float32),
        "lnf_b": jnp.zeros((1, C), jnp.float32),
        "w_lm": nrm(ks[6], (C, VOCAB)),
        "b_lm": jnp.zeros((1, VOCAB), jnp.float32),
    }


# --------------------------- pure-JAX reference check ---------------------------
def _ref_forward(params, idx):
    """Independent per-head f32 reference mirroring the PyTorch module."""
    def ln(x, g, b):
        mu = x.mean(-1, keepdims=True)
        var = ((x - mu) ** 2).mean(-1, keepdims=True)
        return (x - mu) / jnp.sqrt(var + EPS) * g + b

    with jax.default_matmul_precision("highest"):
        bsz, seq = idx.shape
        C = N_EMBED
        x = jnp.take(params["tok_emb"], idx, axis=0) + params["pos_emb"][:seq][None]
        mask = jnp.tril(jnp.ones((seq, seq), bool))
        for l in range(N_LAYER):
            h = ln(x, params["ln1_g"][l, 0], params["ln1_b"][l, 0])
            qkv = h @ params["wqkv"][l]
            q, k, v = qkv[..., :C], qkv[..., C:2 * C], qkv[..., 2 * C:]
            outs = []
            for hh in range(NUM_HEADS):
                sl = slice(hh * HEAD_SIZE, (hh + 1) * HEAD_SIZE)
                s = jnp.einsum("btd,bsd->bts", q[..., sl], k[..., sl]) / math.sqrt(HEAD_SIZE)
                s = jnp.where(mask, s, -jnp.inf)
                w = jax.nn.softmax(s, axis=-1)
                outs.append(jnp.einsum("bts,bsd->btd", w, v[..., sl]))
            att = jnp.concatenate(outs, -1) @ params["wproj"][l] + params["bproj"][l, 0]
            x = x + att
            h2 = ln(x, params["ln2_g"][l, 0], params["ln2_b"][l, 0])
            f = jnp.maximum(h2 @ params["w1"][l] + params["b1"][l, 0], 0.0)
            f = f @ params["w2"][l] + params["b2"][l, 0]
            x = x + f
        x = ln(x, params["lnf_g"][0], params["lnf_b"][0])
        return x @ params["w_lm"] + params["b_lm"][0]


# -------------------------------------- main ------------------------------------
if __name__ == "__main__":
    key = jax.random.PRNGKey(0)
    pkey, ikey = jax.random.split(key)
    params = init_params(pkey)
    packed = pack_params(params)        # one-time prep, off the per-call path
    idx = jax.random.randint(ikey, (B, T), 0, VOCAB, dtype=jnp.int32)

    fwd = jax.jit(char_gpt_forward)
    logits = jax.block_until_ready(fwd(packed, idx))

    ref = _ref_forward(params, idx)
    assert logits.shape == (B, T, VOCAB)
    # tolerance covers bf16 matmul inputs + the EUP approximate reciprocal
    max_err = jnp.max(jnp.abs(logits - ref))
    assert jnp.allclose(logits, ref, atol=2e-2, rtol=2e-2), (
        f"mismatch vs JAX reference (max abs err {max_err})")

    print("KERNEL_OK")
</pallas_src>

<mosaic_0001>
module attributes {stable_mosaic.version = 11 : i64} {
  func.func @char_gpt_kernel(%arg0: i32, %arg1: memref<8x32xf32, #tpu.memory_space<vmem>>, %arg2: memref<2x32x256xbf16, #tpu.memory_space<vmem>>, %arg3: memref<2x128x32xbf16, #tpu.memory_space<vmem>>, %arg4: memref<32x128xbf16, #tpu.memory_space<vmem>>, %arg5: memref<24x128xf32, #tpu.memory_space<vmem>>, %arg6: memref<8x128xf32, #tpu.memory_space<vmem>>) attributes {dimension_semantics = [#tpu.dimension_semantics<parallel>], iteration_bounds = array<i64: 2>, scalar_prefetch = 0 : i64, scratch_operands = 0 : i64, tpu.core_type = #tpu.core_type<tc>, window_params = [{transform_indices = @transform_0, window_bounds = array<i64: 8, 32>}, {pipeline_mode = #tpu.pipeline_mode<synchronous>, transform_indices = @transform_1, window_bounds = array<i64: 2, 32, 256>}, {pipeline_mode = #tpu.pipeline_mode<synchronous>, transform_indices = @transform_2, window_bounds = array<i64: 2, 128, 32>}, {pipeline_mode = #tpu.pipeline_mode<synchronous>, transform_indices = @transform_3, window_bounds = array<i64: 32, 128>}, {pipeline_mode = #tpu.pipeline_mode<synchronous>, transform_indices = @transform_4, window_bounds = array<i64: 24, 128>}, {transform_indices = @transform_5, window_bounds = array<i64: 8, 128>}]} {
    %c0 = arith.constant 0 : index
    %c0_0 = arith.constant 0 : index
    %0 = vector.load %arg1[%c0, %c0_0] : memref<8x32xf32, #tpu.memory_space<vmem>>, vector<8x32xf32>
    %c0_1 = arith.constant 0 : index
    %c0_2 = arith.constant 0 : index
    %1 = vector.load %arg5[%c0_1, %c0_2] : memref<24x128xf32, #tpu.memory_space<vmem>>, vector<24x128xf32>
    %2 = tpu.iota {dimensions = array<i32: 0>} : vector<4x1x32xi32>
    %3 = tpu.iota {dimensions = array<i32: 2>} : vector<4x1x32xi32>
    %c8_i32 = arith.constant 8 : i32
    %4 = vector.broadcast %c8_i32 : i32 to vector<4x1x32xi32>
    %5 = arith.muli %2, %4 : vector<4x1x32xi32>
    %6 = arith.cmpi sge, %3, %5 : vector<4x1x32xi32>
    %c1_i32 = arith.constant 1 : i32
    %7 = vector.broadcast %c1_i32 : i32 to vector<4x1x32xi32>
    %8 = arith.addi %2, %7 : vector<4x1x32xi32>
    %c8_i32_3 = arith.constant 8 : i32
    %9 = vector.broadcast %c8_i32_3 : i32 to vector<4x1x32xi32>
    %10 = arith.muli %8, %9 : vector<4x1x32xi32>
    %11 = arith.cmpi slt, %3, %10 : vector<4x1x32xi32>
    %12 = arith.andi %6, %11 : vector<4x1x32xi1>
    %cst = arith.constant 0.353553385 : f32
    %cst_4 = arith.constant 0.000000e+00 : f32
    %13 = vector.broadcast %cst : f32 to vector<4x1x32xf32>
    %14 = vector.broadcast %cst_4 : f32 to vector<4x1x32xf32>
    %15 = arith.select %12, %13, %14 : vector<4x1x32xi1>, vector<4x1x32xf32>
    %cst_5 = arith.constant 1.000000e+00 : f32
    %cst_6 = arith.constant 0.000000e+00 : f32
    %16 = vector.broadcast %cst_5 : f32 to vector<4x1x32xf32>
    %17 = vector.broadcast %cst_6 : f32 to vector<4x1x32xf32>
    %18 = arith.select %12, %16, %17 : vector<4x1x32xi1>, vector<4x1x32xf32>
    %19 = tpu.iota {dimensions = array<i32: 0>} : vector<32x8xi32>
    %c8_i32_7 = arith.constant 8 : i32
    %c0_i32 = arith.constant 0 : i32
    %20 = arith.cmpi eq, %c8_i32_7, %c0_i32 : i32
    %c1_i32_8 = arith.constant 1 : i32
    %21 = arith.select %20, %c1_i32_8, %c8_i32_7 : i32
    %22 = vector.broadcast %21 : i32 to vector<32x8xi32>
    %23 = arith.remsi %19, %22 : vector<32x8xi32>
    %c0_i32_9 = arith.constant 0 : i32
    %24 = vector.broadcast %c0_i32_9 : i32 to vector<32x8xi32>
    %25 = arith.cmpi ne, %23, %24 : vector<32x8xi32>
    %c0_i32_10 = arith.constant 0 : i32
    %26 = vector.broadcast %c0_i32_10 : i32 to vector<32x8xi32>
    %27 = arith.cmpi slt, %23, %26 : vector<32x8xi32>
    %c0_i32_11 = arith.constant 0 : i32
    %28 = arith.cmpi slt, %21, %c0_i32_11 : i32
    %29 = vector.broadcast %28 : i1 to vector<32x8xi1>
    %30 = vector.broadcast %29 : vector<32x8xi1> to vector<32x8xi1>
    %31 = arith.xori %27, %30 : vector<32x8xi1>
    %32 = arith.andi %31, %25 : vector<32x8xi1>
    %33 = vector.broadcast %21 : i32 to vector<32x8xi32>
    %34 = arith.addi %23, %33 : vector<32x8xi32>
    %35 = arith.select %32, %34, %23 : vector<32x8xi1>, vector<32x8xi32>
    %36 = tpu.iota {dimensions = array<i32: 1>} : vector<32x8xi32>
    %37 = arith.cmpi sle, %36, %35 : vector<32x8xi32>
    %38 = vector.extract_strided_slice %1 {offsets = [0, 0], sizes = [1, 32], strides = [1, 1]} : vector<24x128xf32> to vector<1x32xf32>
    %39 = vector.extract_strided_slice %1 {offsets = [1, 0], sizes = [1, 32], strides = [1, 1]} : vector<24x128xf32> to vector<1x32xf32>
    %40 = vector.extract_strided_slice %1 {offsets = [2, 0], sizes = [1, 32], strides = [1, 1]} : vector<24x128xf32> to vector<1x32xf32>
    %41 = vector.extract_strided_slice %1 {offsets = [3, 0], sizes = [1, 32], strides = [1, 1]} : vector<24x128xf32> to vector<1x32xf32>
    %42 = vector.extract_strided_slice %1 {offsets = [4, 0], sizes = [1, 32], strides = [1, 1]} : vector<24x128xf32> to vector<1x32xf32>
    %43 = vector.extract_strided_slice %1 {offsets = [5, 0], sizes = [1, 128], strides = [1, 1]} : vector<24x128xf32> to vector<1x128xf32>
    %44 = vector.extract_strided_slice %1 {offsets = [6, 0], sizes = [1, 32], strides = [1, 1]} : vector<24x128xf32> to vector<1x32xf32>
    %c0_12 = arith.constant 0 : index
    %c0_13 = arith.constant 0 : index
    %c0_14 = arith.constant 0 : index
    %45 = vector.load %arg2[%c0_12, %c0_13, %c0_14] : memref<2x32x256xbf16, #tpu.memory_space<vmem>>, vector<1x32x256xbf16>
    %46 = vector.shape_cast %45 : vector<1x32x256xbf16> to vector<32x256xbf16>
    %47 = vector.extract_strided_slice %46 {offsets = [0, 0], sizes = [32, 96], strides = [1, 1]} : vector<32x256xbf16> to vector<32x96xbf16>
    %48 = vector.extract_strided_slice %46 {offsets = [0, 96], sizes = [32, 32], strides = [1, 1]} : vector<32x256xbf16> to vector<32x32xbf16>
    %49 = vector.extract_strided_slice %46 {offsets = [0, 128], sizes = [32, 128], strides = [1, 1]} : vector<32x256xbf16> to vector<32x128xbf16>
    %c0_15 = arith.constant 0 : index
    %c0_16 = arith.constant 0 : index
    %c0_17 = arith.constant 0 : index
    %50 = vector.load %arg3[%c0_15, %c0_16, %c0_17] : memref<2x128x32xbf16, #tpu.memory_space<vmem>>, vector<1x128x32xbf16>
    %51 = vector.shape_cast %50 : vector<1x128x32xbf16> to vector<128x32xbf16>
    %cst_18 = arith.constant dense<0.000000e+00> : vector<8xf32>
    %52 = vector.multi_reduction <add>, %0, %cst_18 [1] : vector<8x32xf32> to vector<8xf32>
    %53 = vector.shape_cast %52 : vector<8xf32> to vector<8x1xf32>
    %cst_19 = arith.constant 3.200000e+01 : f32
    %54 = vector.broadcast %cst_19 : f32 to vector<8x1xf32>
    %55 = arith.divf %53, %54 : vector<8x1xf32>
    %56 = vector.broadcast %55 : vector<8x1xf32> to vector<8x32xf32>
    %57 = arith.subf %0, %56 : vector<8x32xf32>
    %58 = arith.mulf %57, %57 : vector<8x32xf32>
    %cst_20 = arith.constant dense<0.000000e+00> : vector<8xf32>
    %59 = vector.multi_reduction <add>, %58, %cst_20 [1] : vector<8x32xf32> to vector<8xf32>
    %60 = vector.shape_cast %59 : vector<8xf32> to vector<8x1xf32>
    %cst_21 = arith.constant 3.200000e+01 : f32
    %61 = vector.broadcast %cst_21 : f32 to vector<8x1xf32>
    %62 = arith.divf %60, %61 : vector<8x1xf32>
    %63 = vector.broadcast %55 : vector<8x1xf32> to vector<8x32xf32>
    %64 = arith.subf %0, %63 : vector<8x32xf32>
    %cst_22 = arith.constant 9.99999974E-6 : f32
    %65 = vector.broadcast %cst_22 : f32 to vector<8x1xf32>
    %66 = arith.addf %62, %65 : vector<8x1xf32>
    %67 = math.rsqrt %66 : vector<8x1xf32>
    %68 = vector.broadcast %67 : vector<8x1xf32> to vector<8x32xf32>
    %69 = arith.mulf %64, %68 : vector<8x32xf32>
    %70 = vector.broadcast %38 : vector<1x32xf32> to vector<8x32xf32>
    %71 = arith.mulf %69, %70 : vector<8x32xf32>
    %72 = vector.broadcast %39 : vector<1x32xf32> to vector<8x32xf32>
    %73 = arith.addf %71, %72 : vector<8x32xf32>
    %74 = arith.truncf %73 : vector<8x32xf32> to vector<8x32xbf16>
    %cst_23 = arith.constant dense<0.000000e+00> : vector<8x96xf32>
    %75 = tpu.matmul %74, %47, %cst_23 {dimension_numbers = #tpu.dot_dimension_numbers<[1], [0], [0], [1], [0, 0, 1, 1], [], []>} : vector<8x32xbf16>, vector<32x96xbf16>, vector<8x96xf32> -> vector<8x96xf32>
    %76 = vector.extract_strided_slice %75 {offsets = [0, 0], sizes = [8, 32], strides = [1, 1]} : vector<8x96xf32> to vector<8x32xf32>
    %77 = vector.extract_strided_slice %75 {offsets = [0, 32], sizes = [8, 32], strides = [1, 1]} : vector<8x96xf32> to vector<8x32xf32>
    %78 = vector.extract_strided_slice %75 {offsets = [0, 64], sizes = [8, 32], strides = [1, 1]} : vector<8x96xf32> to vector<8x32xf32>
    %79 = vector.shape_cast %76 : vector<8x32xf32> to vector<1x8x32xf32>
    %80 = vector.broadcast %79 : vector<1x8x32xf32> to vector<4x8x32xf32>
    %81 = vector.broadcast %15 : vector<4x1x32xf32> to vector<4x8x32xf32>
    %82 = arith.mulf %80, %81 : vector<4x8x32xf32>
    %83 = vector.shape_cast %82 : vector<4x8x32xf32> to vector<32x32xf32>
    %84 = arith.truncf %83 : vector<32x32xf32> to vector<32x32xbf16>
    %85 = arith.truncf %77 : vector<8x32xf32> to vector<8x32xbf16>
    %cst_24 = arith.constant dense<0.000000e+00> : vector<32x8xf32>
    %86 = tpu.matmul %84, %85, %cst_24 {dimension_numbers = #tpu.dot_dimension_numbers<[1], [1], [0], [0], [0, 0, 1, 0], [], []>} : vector<32x32xbf16>, vector<8x32xbf16>, vector<32x8xf32> -> vector<32x8xf32>
    %cst_25 = arith.constant -1.000000e+30 : f32
    %87 = vector.broadcast %cst_25 : f32 to vector<32x8xf32>
    %88 = arith.select %37, %86, %87 : vector<32x8xi1>, vector<32x8xf32>
    %cst_26 = arith.constant dense<0xFF800000> : vector<32xf32>
    %89 = vector.multi_reduction <maximumf>, %88, %cst_26 [1] : vector<32x8xf32> to vector<32xf32>
    %90 = vector.shape_cast %89 : vector<32xf32> to vector<32x1xf32>
    %91 = vector.broadcast %90 : vector<32x1xf32> to vector<32x8xf32>
    %92 = arith.subf %88, %91 : vector<32x8xf32>
    %93 = math.exp %92 : vector<32x8xf32>
    %cst_27 = arith.constant dense<0.000000e+00> : vector<32xf32>
    %94 = vector.multi_reduction <add>, %93, %cst_27 [1] : vector<32x8xf32> to vector<32xf32>
    %95 = vector.shape_cast %94 : vector<32xf32> to vector<32x1xf32>
    %96 = tpu.reciprocal %95 {approx = true} : vector<32x1xf32> -> vector<32x1xf32>
    %97 = vector.broadcast %96 : vector<32x1xf32> to vector<32x8xf32>
    %98 = arith.mulf %93, %97 : vector<32x8xf32>
    %99 = arith.truncf %98 : vector<32x8xf32> to vector<32x8xbf16>
    %100 = arith.truncf %78 : vector<8x32xf32> to vector<8x32xbf16>
    %cst_28 = arith.constant dense<0.000000e+00> : vector<32x32xf32>
    %101 = tpu.matmul %99, %100, %cst_28 {dimension_numbers = #tpu.dot_dimension_numbers<[1], [0], [0], [1], [0, 0, 1, 1], [], []>} : vector<32x8xbf16>, vector<8x32xbf16>, vector<32x32xf32> -> vector<32x32xf32>
    %102 = vector.shape_cast %101 : vector<32x32xf32> to vector<4x8x32xf32>
    %103 = vector.broadcast %18 : vector<4x1x32xf32> to vector<4x8x32xf32>
    %104 = arith.mulf %102, %103 : vector<4x8x32xf32>
    %cst_29 = arith.constant dense<0.000000e+00> : vector<8x32xf32>
    %105 = vector.multi_reduction <add>, %104, %cst_29 [0] : vector<4x8x32xf32> to vector<8x32xf32>
    %106 = arith.truncf %105 : vector<8x32xf32> to vector<8x32xbf16>
    %cst_30 = arith.constant dense<0.000000e+00> : vector<8x32xf32>
    %107 = tpu.matmul %106, %48, %cst_30 {dimension_numbers = #tpu.dot_dimension_numbers<[1], [0], [0], [1], [0, 0, 1, 1], [], []>} : vector<8x32xbf16>, vector<32x32xbf16>, vector<8x32xf32> -> vector<8x32xf32>
    %108 = vector.broadcast %40 : vector<1x32xf32> to vector<8x32xf32>
    %109 = arith.addf %107, %108 : vector<8x32xf32>
    %110 = arith.addf %0, %109 : vector<8x32xf32>
    %cst_31 = arith.constant dense<0.000000e+00> : vector<8xf32>
    %111 = vector.multi_reduction <add>, %110, %cst_31 [1] : vector<8x32xf32> to vector<8xf32>
    %112 = vector.shape_cast %111 : vector<8xf32> to vector<8x1xf32>
    %cst_32 = arith.constant 3.200000e+01 : f32
    %113 = vector.broadcast %cst_32 : f32 to vector<8x1xf32>
    %114 = arith.divf %112, %113 : vector<8x1xf32>
    %115 = vector.broadcast %114 : vector<8x1xf32> to vector<8x32xf32>
    %116 = arith.subf %110, %115 : vector<8x32xf32>
    %117 = arith.mulf %116, %116 : vector<8x32xf32>
    %cst_33 = arith.constant dense<0.000000e+00> : vector<8xf32>
    %118 = vector.multi_reduction <add>, %117, %cst_33 [1] : vector<8x32xf32> to vector<8xf32>
    %119 = vector.shape_cast %118 : vector<8xf32> to vector<8x1xf32>
    %cst_34 = arith.constant 3.200000e+01 : f32
    %120 = vector.broadcast %cst_34 : f32 to vector<8x1xf32>
    %121 = arith.divf %119, %120 : vector<8x1xf32>
    %122 = vector.broadcast %114 : vector<8x1xf32> to vector<8x32xf32>
    %123 = arith.subf %110, %122 : vector<8x32xf32>
    %cst_35 = arith.constant 9.99999974E-6 : f32
    %124 = vector.broadcast %cst_35 : f32 to vector<8x1xf32>
    %125 = arith.addf %121, %124 : vector<8x1xf32>
    %126 = math.rsqrt %125 : vector<8x1xf32>
    %127 = vector.broadcast %126 : vector<8x1xf32> to vector<8x32xf32>
    %128 = arith.mulf %123, %127 : vector<8x32xf32>
    %129 = vector.broadcast %41 : vector<1x32xf32> to vector<8x32xf32>
    %130 = arith.mulf %128, %129 : vector<8x32xf32>
    %131 = vector.broadcast %42 : vector<1x32xf32> to vector<8x32xf32>
    %132 = arith.addf %130, %131 : vector<8x32xf32>
    %133 = arith.truncf %132 : vector<8x32xf32> to vector<8x32xbf16>
    %cst_36 = arith.constant dense<0.000000e+00> : vector<8x128xf32>
    %134 = tpu.matmul %133, %49, %cst_36 {dimension_numbers = #tpu.dot_dimension_numbers<[1], [0], [0], [1], [0, 0, 1, 1], [], []>} : vector<8x32xbf16>, vector<32x128xbf16>, vector<8x128xf32> -> vector<8x128xf32>
    %135 = vector.broadcast %43 : vector<1x128xf32> to vector<8x128xf32>
    %136 = arith.addf %134, %135 : vector<8x128xf32>
    %cst_37 = arith.constant 0.000000e+00 : f32
    %137 = vector.broadcast %cst_37 : f32 to vector<8x128xf32>
    %138 = arith.maximumf %136, %137 : vector<8x128xf32>
    %139 = arith.truncf %138 : vector<8x128xf32> to vector<8x128xbf16>
    %cst_38 = arith.constant dense<0.000000e+00> : vector<8x32xf32>
    %140 = tpu.matmul %139, %51, %cst_38 {dimension_numbers = #tpu.dot_dimension_numbers<[1], [0], [0], [1], [0, 0, 1, 1], [], []>} : vector<8x128xbf16>, vector<128x32xbf16>, vector<8x32xf32> -> vector<8x32xf32>
    %141 = vector.broadcast %44 : vector<1x32xf32> to vector<8x32xf32>
    %142 = arith.addf %140, %141 : vector<8x32xf32>
    %143 = arith.addf %110, %142 : vector<8x32xf32>
    %144 = vector.extract_strided_slice %1 {offsets = [7, 0], sizes = [1, 32], strides = [1, 1]} : vector<24x128xf32> to vector<1x32xf32>
    %145 = vector.extract_strided_slice %1 {offsets = [8, 0], sizes = [1, 32], strides = [1, 1]} : vector<24x128xf32> to vector<1x32xf32>
    %146 = vector.extract_strided_slice %1 {offsets = [9, 0], sizes = [1, 32], strides = [1, 1]} : vector<24x128xf32> to vector<1x32xf32>
    %147 = vector.extract_strided_slice %1 {offsets = [10, 0], sizes = [1, 32], strides = [1, 1]} : vector<24x128xf32> to vector<1x32xf32>
    %148 = vector.extract_strided_slice %1 {offsets = [11, 0], sizes = [1, 32], strides = [1, 1]} : vector<24x128xf32> to vector<1x32xf32>
    %149 = vector.extract_strided_slice %1 {offsets = [12, 0], sizes = [1, 128], strides = [1, 1]} : vector<24x128xf32> to vector<1x128xf32>
    %150 = vector.extract_strided_slice %1 {offsets = [13, 0], sizes = [1, 32], strides = [1, 1]} : vector<24x128xf32> to vector<1x32xf32>
    %c1 = arith.constant 1 : index
    %c0_39 = arith.constant 0 : index
    %c0_40 = arith.constant 0 : index
    %151 = vector.load %arg2[%c1, %c0_39, %c0_40] : memref<2x32x256xbf16, #tpu.memory_space<vmem>>, vector<1x32x256xbf16>
    %152 = vector.shape_cast %151 : vector<1x32x256xbf16> to vector<32x256xbf16>
    %153 = vector.extract_strided_slice %152 {offsets = [0, 0], sizes = [32, 96], strides = [1, 1]} : vector<32x256xbf16> to vector<32x96xbf16>
    %154 = vector.extract_strided_slice %152 {offsets = [0, 96], sizes = [32, 32], strides = [1, 1]} : vector<32x256xbf16> to vector<32x32xbf16>
    %155 = vector.extract_strided_slice %152 {offsets = [0, 128], sizes = [32, 128], strides = [1, 1]} : vector<32x256xbf16> to vector<32x128xbf16>
    %c1_41 = arith.constant 1 : index
    %c0_42 = arith.constant 0 : index
    %c0_43 = arith.constant 0 : index
    %156 = vector.load %arg3[%c1_41, %c0_42, %c0_43] : memref<2x128x32xbf16, #tpu.memory_space<vmem>>, vector<1x128x32xbf16>
    %157 = vector.shape_cast %156 : vector<1x128x32xbf16> to vector<128x32xbf16>
    %cst_44 = arith.constant dense<0.000000e+00> : vector<8xf32>
    %158 = vector.multi_reduction <add>, %143, %cst_44 [1] : vector<8x32xf32> to vector<8xf32>
    %159 = vector.shape_cast %158 : vector<8xf32> to vector<8x1xf32>
    %cst_45 = arith.constant 3.200000e+01 : f32
    %160 = vector.broadcast %cst_45 : f32 to vector<8x1xf32>
    %161 = arith.divf %159, %160 : vector<8x1xf32>
    %162 = vector.broadcast %161 : vector<8x1xf32> to vector<8x32xf32>
    %163 = arith.subf %143, %162 : vector<8x32xf32>
    %164 = arith.mulf %163, %163 : vector<8x32xf32>
    %cst_46 = arith.constant dense<0.000000e+00> : vector<8xf32>
    %165 = vector.multi_reduction <add>, %164, %cst_46 [1] : vector<8x32xf32> to vector<8xf32>
    %166 = vector.shape_cast %165 : vector<8xf32> to vector<8x1xf32>
    %cst_47 = arith.constant 3.200000e+01 : f32
    %167 = vector.broadcast %cst_47 : f32 to vector<8x1xf32>
    %168 = arith.divf %166, %167 : vector<8x1xf32>
    %169 = vector.broadcast %161 : vector<8x1xf32> to vector<8x32xf32>
    %170 = arith.subf %143, %169 : vector<8x32xf32>
    %cst_48 = arith.constant 9.99999974E-6 : f32
    %171 = vector.broadcast %cst_48 : f32 to vector<8x1xf32>
    %172 = arith.addf %168, %171 : vector<8x1xf32>
    %173 = math.rsqrt %172 : vector<8x1xf32>
    %174 = vector.broadcast %173 : vector<8x1xf32> to vector<8x32xf32>
    %175 = arith.mulf %170, %174 : vector<8x32xf32>
    %176 = vector.broadcast %144 : vector<1x32xf32> to vector<8x32xf32>
    %177 = arith.mulf %175, %176 : vector<8x32xf32>
    %178 = vector.broadcast %145 : vector<1x32xf32> to vector<8x32xf32>
    %179 = arith.addf %177, %178 : vector<8x32xf32>
    %180 = arith.truncf %179 : vector<8x32xf32> to vector<8x32xbf16>
    %cst_49 = arith.constant dense<0.000000e+00> : vector<8x96xf32>
    %181 = tpu.matmul %180, %153, %cst_49 {dimension_numbers = #tpu.dot_dimension_numbers<[1], [0], [0], [1], [0, 0, 1, 1], [], []>} : vector<8x32xbf16>, vector<32x96xbf16>, vector<8x96xf32> -> vector<8x96xf32>
    %182 = vector.extract_strided_slice %181 {offsets = [0, 0], sizes = [8, 32], strides = [1, 1]} : vector<8x96xf32> to vector<8x32xf32>
    %183 = vector.extract_strided_slice %181 {offsets = [0, 32], sizes = [8, 32], strides = [1, 1]} : vector<8x96xf32> to vector<8x32xf32>
    %184 = vector.extract_strided_slice %181 {offsets = [0, 64], sizes = [8, 32], strides = [1, 1]} : vector<8x96xf32> to vector<8x32xf32>
    %185 = vector.shape_cast %182 : vector<8x32xf32> to vector<1x8x32xf32>
    %186 = vector.broadcast %185 : vector<1x8x32xf32> to vector<4x8x32xf32>
    %187 = vector.broadcast %15 : vector<4x1x32xf32> to vector<4x8x32xf32>
    %188 = arith.mulf %186, %187 : vector<4x8x32xf32>
    %189 = vector.shape_cast %188 : vector<4x8x32xf32> to vector<32x32xf32>
    %190 = arith.truncf %189 : vector<32x32xf32> to vector<32x32xbf16>
    %191 = arith.truncf %183 : vector<8x32xf32> to vector<8x32xbf16>
    %cst_50 = arith.constant dense<0.000000e+00> : vector<32x8xf32>
    %192 = tpu.matmul %190, %191, %cst_50 {dimension_numbers = #tpu.dot_dimension_numbers<[1], [1], [0], [0], [0, 0, 1, 0], [], []>} : vector<32x32xbf16>, vector<8x32xbf16>, vector<32x8xf32> -> vector<32x8xf32>
    %cst_51 = arith.constant -1.000000e+30 : f32
    %193 = vector.broadcast %cst_51 : f32 to vector<32x8xf32>
    %194 = arith.select %37, %192, %193 : vector<32x8xi1>, vector<32x8xf32>
    %cst_52 = arith.constant dense<0xFF800000> : vector<32xf32>
    %195 = vector.multi_reduction <maximumf>, %194, %cst_52 [1] : vector<32x8xf32> to vector<32xf32>
    %196 = vector.shape_cast %195 : vector<32xf32> to vector<32x1xf32>
    %197 = vector.broadcast %196 : vector<32x1xf32> to vector<32x8xf32>
    %198 = arith.subf %194, %197 : vector<32x8xf32>
    %199 = math.exp %198 : vector<32x8xf32>
    %cst_53 = arith.constant dense<0.000000e+00> : vector<32xf32>
    %200 = vector.multi_reduction <add>, %199, %cst_53 [1] : vector<32x8xf32> to vector<32xf32>
    %201 = vector.shape_cast %200 : vector<32xf32> to vector<32x1xf32>
    %202 = tpu.reciprocal %201 {approx = true} : vector<32x1xf32> -> vector<32x1xf32>
    %203 = vector.broadcast %202 : vector<32x1xf32> to vector<32x8xf32>
    %204 = arith.mulf %199, %203 : vector<32x8xf32>
    %205 = arith.truncf %204 : vector<32x8xf32> to vector<32x8xbf16>
    %206 = arith.truncf %184 : vector<8x32xf32> to vector<8x32xbf16>
    %cst_54 = arith.constant dense<0.000000e+00> : vector<32x32xf32>
    %207 = tpu.matmul %205, %206, %cst_54 {dimension_numbers = #tpu.dot_dimension_numbers<[1], [0], [0], [1], [0, 0, 1, 1], [], []>} : vector<32x8xbf16>, vector<8x32xbf16>, vector<32x32xf32> -> vector<32x32xf32>
    %208 = vector.shape_cast %207 : vector<32x32xf32> to vector<4x8x32xf32>
    %209 = vector.broadcast %18 : vector<4x1x32xf32> to vector<4x8x32xf32>
    %210 = arith.mulf %208, %209 : vector<4x8x32xf32>
    %cst_55 = arith.constant dense<0.000000e+00> : vector<8x32xf32>
    %211 = vector.multi_reduction <add>, %210, %cst_55 [0] : vector<4x8x32xf32> to vector<8x32xf32>
    %212 = arith.truncf %211 : vector<8x32xf32> to vector<8x32xbf16>
    %cst_56 = arith.constant dense<0.000000e+00> : vector<8x32xf32>
    %213 = tpu.matmul %212, %154, %cst_56 {dimension_numbers = #tpu.dot_dimension_numbers<[1], [0], [0], [1], [0, 0, 1, 1], [], []>} : vector<8x32xbf16>, vector<32x32xbf16>, vector<8x32xf32> -> vector<8x32xf32>
    %214 = vector.broadcast %146 : vector<1x32xf32> to vector<8x32xf32>
    %215 = arith.addf %213, %214 : vector<8x32xf32>
    %216 = arith.addf %143, %215 : vector<8x32xf32>
    %cst_57 = arith.constant dense<0.000000e+00> : vector<8xf32>
    %217 = vector.multi_reduction <add>, %216, %cst_57 [1] : vector<8x32xf32> to vector<8xf32>
    %218 = vector.shape_cast %217 : vector<8xf32> to vector<8x1xf32>
    %cst_58 = arith.constant 3.200000e+01 : f32
    %219 = vector.broadcast %cst_58 : f32 to vector<8x1xf32>
    %220 = arith.divf %218, %219 : vector<8x1xf32>
    %221 = vector.broadcast %220 : vector<8x1xf32> to vector<8x32xf32>
    %222 = arith.subf %216, %221 : vector<8x32xf32>
    %223 = arith.mulf %222, %222 : vector<8x32xf32>
    %cst_59 = arith.constant dense<0.000000e+00> : vector<8xf32>
    %224 = vector.multi_reduction <add>, %223, %cst_59 [1] : vector<8x32xf32> to vector<8xf32>
    %225 = vector.shape_cast %224 : vector<8xf32> to vector<8x1xf32>
    %cst_60 = arith.constant 3.200000e+01 : f32
    %226 = vector.broadcast %cst_60 : f32 to vector<8x1xf32>
    %227 = arith.divf %225, %226 : vector<8x1xf32>
    %228 = vector.broadcast %220 : vector<8x1xf32> to vector<8x32xf32>
    %229 = arith.subf %216, %228 : vector<8x32xf32>
    %cst_61 = arith.constant 9.99999974E-6 : f32
    %230 = vector.broadcast %cst_61 : f32 to vector<8x1xf32>
    %231 = arith.addf %227, %230 : vector<8x1xf32>
    %232 = math.rsqrt %231 : vector<8x1xf32>
    %233 = vector.broadcast %232 : vector<8x1xf32> to vector<8x32xf32>
    %234 = arith.mulf %229, %233 : vector<8x32xf32>
    %235 = vector.broadcast %147 : vector<1x32xf32> to vector<8x32xf32>
    %236 = arith.mulf %234, %235 : vector<8x32xf32>
    %237 = vector.broadcast %148 : vector<1x32xf32> to vector<8x32xf32>
    %238 = arith.addf %236, %237 : vector<8x32xf32>
    %239 = arith.truncf %238 : vector<8x32xf32> to vector<8x32xbf16>
    %cst_62 = arith.constant dense<0.000000e+00> : vector<8x128xf32>
    %240 = tpu.matmul %239, %155, %cst_62 {dimension_numbers = #tpu.dot_dimension_numbers<[1], [0], [0], [1], [0, 0, 1, 1], [], []>} : vector<8x32xbf16>, vector<32x128xbf16>, vector<8x128xf32> -> vector<8x128xf32>
    %241 = vector.broadcast %149 : vector<1x128xf32> to vector<8x128xf32>
    %242 = arith.addf %240, %241 : vector<8x128xf32>
    %cst_63 = arith.constant 0.000000e+00 : f32
    %243 = vector.broadcast %cst_63 : f32 to vector<8x128xf32>
    %244 = arith.maximumf %242, %243 : vector<8x128xf32>
    %245 = arith.truncf %244 : vector<8x128xf32> to vector<8x128xbf16>
    %cst_64 = arith.constant dense<0.000000e+00> : vector<8x32xf32>
    %246 = tpu.matmul %245, %157, %cst_64 {dimension_numbers = #tpu.dot_dimension_numbers<[1], [0], [0], [1], [0, 0, 1, 1], [], []>} : vector<8x128xbf16>, vector<128x32xbf16>, vector<8x32xf32> -> vector<8x32xf32>
    %247 = vector.broadcast %150 : vector<1x32xf32> to vector<8x32xf32>
    %248 = arith.addf %246, %247 : vector<8x32xf32>
    %249 = arith.addf %216, %248 : vector<8x32xf32>
    %250 = vector.extract_strided_slice %1 {offsets = [14, 0], sizes = [1, 32], strides = [1, 1]} : vector<24x128xf32> to vector<1x32xf32>
    %251 = vector.extract_strided_slice %1 {offsets = [15, 0], sizes = [1, 32], strides = [1, 1]} : vector<24x128xf32> to vector<1x32xf32>
    %cst_65 = arith.constant dense<0.000000e+00> : vector<8xf32>
    %252 = vector.multi_reduction <add>, %249, %cst_65 [1] : vector<8x32xf32> to vector<8xf32>
    %253 = vector.shape_cast %252 : vector<8xf32> to vector<8x1xf32>
    %cst_66 = arith.constant 3.200000e+01 : f32
    %254 = vector.broadcast %cst_66 : f32 to vector<8x1xf32>
    %255 = arith.divf %253, %254 : vector<8x1xf32>
    %256 = vector.broadcast %255 : vector<8x1xf32> to vector<8x32xf32>
    %257 = arith.subf %249, %256 : vector<8x32xf32>
    %258 = arith.mulf %257, %257 : vector<8x32xf32>
    %cst_67 = arith.constant dense<0.000000e+00> : vector<8xf32>
    %259 = vector.multi_reduction <add>, %258, %cst_67 [1] : vector<8x32xf32> to vector<8xf32>
    %260 = vector.shape_cast %259 : vector<8xf32> to vector<8x1xf32>
    %cst_68 = arith.constant 3.200000e+01 : f32
    %261 = vector.broadcast %cst_68 : f32 to vector<8x1xf32>
    %262 = arith.divf %260, %261 : vector<8x1xf32>
    %263 = vector.broadcast %255 : vector<8x1xf32> to vector<8x32xf32>
    %264 = arith.subf %249, %263 : vector<8x32xf32>
    %cst_69 = arith.constant 9.99999974E-6 : f32
    %265 = vector.broadcast %cst_69 : f32 to vector<8x1xf32>
    %266 = arith.addf %262, %265 : vector<8x1xf32>
    %267 = math.rsqrt %266 : vector<8x1xf32>
    %268 = vector.broadcast %267 : vector<8x1xf32> to vector<8x32xf32>
    %269 = arith.mulf %264, %268 : vector<8x32xf32>
    %270 = vector.broadcast %250 : vector<1x32xf32> to vector<8x32xf32>
    %271 = arith.mulf %269, %270 : vector<8x32xf32>
    %272 = vector.broadcast %251 : vector<1x32xf32> to vector<8x32xf32>
    %273 = arith.addf %271, %272 : vector<8x32xf32>
    %274 = arith.truncf %273 : vector<8x32xf32> to vector<8x32xbf16>
    %c0_70 = arith.constant 0 : index
    %c0_71 = arith.constant 0 : index
    %275 = vector.load %arg4[%c0_70, %c0_71] : memref<32x128xbf16, #tpu.memory_space<vmem>>, vector<32x128xbf16>
    %cst_72 = arith.constant dense<0.000000e+00> : vector<8x128xf32>
    %276 = tpu.matmul %274, %275, %cst_72 {dimension_numbers = #tpu.dot_dimension_numbers<[1], [0], [0], [1], [0, 0, 1, 1], [], []>} : vector<8x32xbf16>, vector<32x128xbf16>, vector<8x128xf32> -> vector<8x128xf32>
    %277 = vector.extract_strided_slice %1 {offsets = [16, 0], sizes = [1, 128], strides = [1, 1]} : vector<24x128xf32> to vector<1x128xf32>
    %278 = vector.broadcast %277 : vector<1x128xf32> to vector<8x128xf32>
    %279 = arith.addf %276, %278 : vector<8x128xf32>
    %c0_73 = arith.constant 0 : index
    %c0_74 = arith.constant 0 : index
    %280 = vector.load %arg6[%c0_73, %c0_74] : memref<8x128xf32, #tpu.memory_space<vmem>>, vector<8x128xf32>
    tpu.vector_store %arg6[%c0_73, %c0_74], %279 {strides = array<i32>} : memref<8x128xf32, #tpu.memory_space<vmem>>, vector<8x128xf32>,
    return
  }
  func.func @transform_0(%arg0: i32) -> (i32, i32) {
    %c0_i32 = arith.constant 0 : i32
    %c0_i32_0 = arith.constant 0 : i32
    return %arg0, %c0_i32 : i32, i32
  }
  func.func @transform_1(%arg0: i32) -> (i32, i32, i32) {
    %c0_i32 = arith.constant 0 : i32
    %c0_i32_0 = arith.constant 0 : i32
    %c0_i32_1 = arith.constant 0 : i32
    %c0_i32_2 = arith.constant 0 : i32
    return %c0_i32, %c0_i32_0, %c0_i32_1 : i32, i32, i32
  }
  func.func @transform_2(%arg0: i32) -> (i32, i32, i32) {
    %c0_i32 = arith.constant 0 : i32
    %c0_i32_0 = arith.constant 0 : i32
    %c0_i32_1 = arith.constant 0 : i32
    %c0_i32_2 = arith.constant 0 : i32
    return %c0_i32, %c0_i32_0, %c0_i32_1 : i32, i32, i32
  }
  func.func @transform_3(%arg0: i32) -> (i32, i32) {
    %c0_i32 = arith.constant 0 : i32
    %c0_i32_0 = arith.constant 0 : i32
    %c0_i32_1 = arith.constant 0 : i32
    return %c0_i32, %c0_i32_0 : i32, i32
  }
  func.func @transform_4(%arg0: i32) -> (i32, i32) {
    %c0_i32 = arith.constant 0 : i32
    %c0_i32_0 = arith.constant 0 : i32
    %c0_i32_1 = arith.constant 0 : i32
    return %c0_i32, %c0_i32_0 : i32, i32
  }
  func.func @transform_5(%arg0: i32) -> (i32, i32) {
    %c0_i32 = arith.constant 0 : i32
    %c0_i32_0 = arith.constant 0 : i32
    return %arg0, %c0_i32 : i32, i32
  }
}

</mosaic_0001>

<bundles_post_ra>
// kernel: char_gpt_forward.1
= control target key start
LH: loop header
LB: loop body
LE: loop exit
PB: predicated region body
PF: predicated region fallthrough
CT: control target
= control target key end

     0   :  { %10 = vsyncpa [#allocation3], 0  ;;  %s1944_s0 = inlined_call_operand.vmem [shape: f32[16,32], index: 0, kind: input, shape index: {}]   ;;  %s1945_s1 = inlined_call_operand.vmem [shape: bf16[2,32,256], index: 1, kind: input, shape index: {}]   ;;  %s1946_s2 = inlined_call_operand.vmem [shape: bf16[2,128,32], index: 2, kind: input, shape index: {}]   ;;  %s1947_s3 = inlined_call_operand.vmem [shape: bf16[32,128], index: 3, kind: input, shape index: {}]   ;;  %s1948_s4 = inlined_call_operand.vmem [shape: f32[24,128], index: 4, kind: input, shape index: {}]   ;;  %s1949_s5 = inlined_call_operand.hbm [shape: f32[16,128], index: 5, kind: output, shape index: {}]  }
   0x1   :  { %12 = vsyncpa [#allocation3 + $0x1], 0  ;;  %s1506_s18 = smov 0   ;;  %s1508_s19 = smov 0  }
   0x2   :  { %s1510_s20 = smov 0   ;;  %s1512_s21 = smov 0  }
   0x3 LB: > { %s1527_s22 = sadd.s32 4294967295, %s1469_s21   ;;  %s1144_s23 = sadd.s32 4294967294, %s1469_s21   ;;  %s1469_s21 = sphi %s1512_s21, %s1969_s21   ;;  %s1465_s20 = sphi %s1510_s20, %s1968_s20   ;;  %s1461_s19 = sphi %s1508_s19, %s1967_s19   ;;  %s1457_s18 = sphi %s1506_s18, %s1966_s18  }
   0x4   : > { %s1531_s24 = sadd.s32 1, %s1469_s21   ;;  %s135_s25 = sadd.s32 1, %s1465_s20 }
   0x5   : > { %s132_s26 = ssub.s32 %s1469_s21, %s1531_s24  ;;  %p145_p0 = scmp.ne.s32.totalorder %s1465_s20, %s1461_s19 }
   0x6   : > { %p133_p1 = scmp.eq.s32.totalorder %s132_s26, 0  ;;  %p146_p2 = scmp.eq.s32.totalorder %s1527_s22, 1 }
   0x7   : > { %p151_p3 = scmp.ne.s32.totalorder %s1461_s19, %s1457_s18  ;;  %p152_p4 = scmp.eq.s32.totalorder %s1144_s23, 1 }
   0x8   : > { %s1542_s27 = scalar_select %p133_p1, %s1465_s20, %s135_s25  }
   0x9   : > { %p1544_p5 = por %p146_p2, %p145_p0  ;;  %p1548_p6 = por %p152_p4, %p151_p3 }
   0xa   : > { %p1147_p7 = scmp.ge.s32.totalorder %s1469_s21, 1  ;;  %p189_p8 = scmp.lt.s32.totalorder %s1469_s21, 3 }
   0xc   : > { %p190_p9 = pnand %p1147_p7, %p189_p8 }
   0xd   : > { %p216_p10 = scmp.lt.s32.totalorder (!%p190_p9), %s1527_s22, 1  ;;  %s1472_s26 = smov (!%p190_p9), 96  }
   0xe   : > { %193 = sbr.rel (%p190_p9) target bundleno = 3932 (0xf5c), region = 40  ;;  %s213_s11 = sand.u32 (!%p190_p9), 1, %s1461_s19  }
   0xf   : > { %s1290_s12 = sshll.u32 (!%p190_p9), %s1527_s22, 3  ;;  %s1148_s13 = sshll.u32 (!%p190_p9), %s213_s11, 3 }
  0x10   : > { %s1080_s15 = scalar_lea.hbm (!%p190_p9), %s1949_s5, %s1290_s12  ;;  %s215_s16 = scalar_lea.vmem (!%p190_p9), [#allocation2], %s1148_s13 }
  0x11   : > { %s1082_s17 = sshll.u32 (!%p190_p9), %s215_s16, 4  ;;  %s1084_s23 = sshll.u32 (!%p190_p9), %s1080_s15, 4  ;;  %s1083_s17 = int_to_ptr.vmem [resolvable:$true] %s1082_s17  ;;  %s1085_s23 = int_to_ptr.hbm [resolvable:$true] %s1084_s23 }
  0x12   : > { %s1421_s25 = sshra.s32 (!%p190_p9), %s1085_s23, 4  ;;  %s1427_s10 = scalar_lea.hbm (!%p190_p9), %s1949_s5, 16  ;;  %s1422_s25 = int_to_ptr.hbm [resolvable:$true] %s1421_s25 }
  0x13   : > { %s217_s30 = scalar_select %p216_p10, %s1527_s22, 1  ;;  %vm324_vm0 = vcmask 261120   ;;  %v1471_v2 = vmov 32.0   ;;  %v1156_v14 = vld [vmem:[%s1945_s1 + $0x10] sm:$0xf]  ;;  %v1590_v28 = vld [vmem:[%s1948_s4] sm:$0xff]  ;;  %v225_v40 = vlaneseq }
  0x14   : > { %1363 = vrcp.f32 %v1471_v2  ;;  %v1296_v15 = vld [vmem:[%s1945_s1 + $0x14] sm:$0xf0]  ;;  %v1152_v17 = vld [vmem:[%s1945_s1] sm:$0xf]  ;;  %v1294_v18 = vld [vmem:[%s1945_s1 + $0x4] sm:$0xf0]  ;;  %p1428_p0 = scmp.lt.s32.totalorder %s1422_s25, %s1949_s5 }
  0x15   : > { %s1149_s6 = sshll.u32 %s217_s30, 3  ;;  %v1574_v16 = vor.u32 %v1296_v15, %v1156_v14  ;;  %v1583_v19 = vor.u32 %v1294_v18, %v1152_v17  ;;  %v354_v30 = vperm.slane %v1590_v28, 0  ;;  %v356_v33 = vperm.slane %v1590_v28, 1  ;;  %s1474_s30 = smov 64  }
  0x16   : > { %s219_s9 = scalar_lea.vmem %s1944_s0, %s1149_s6  ;;  %v1599_v41 = vand.u32 127, %v225_v40  ;;  %v1473_v44 = vmov 0.0   ;;  %v248_v58 = vshrl.u32 %v225_v40, 7  ;;  %s1475_s6 = smov 32  }
  0x17   : > { %v1559_v0 = vld [vmem:[%s219_s9] sm:$0xff]  ;;  %380 = vmatpush.bf16.msra.mxu0 %v1574_v16  ;;  %s1070_s22 = scalar_lea.sflag [#allocation3], %s213_s11  ;;  %s1423_s7 = scalar_lea.hbm %s1422_s25, 8 }
  0x18   : > { %v325_v1 = vsel %vm324_vm0, %v1559_v0, 0.0  ;;  %vm228_vm5 = vcmp.ge.s32.totalorder %v1599_v41, 8  ;;  %vm232_vm6 = vcmp.lt.s32.totalorder %v1599_v41, 16  ;;  %vm231_vm7 = vcmp.lt.s32.totalorder %v1599_v41, 8  ;;  %p1424_p11 = scmp.ne.s32.totalorder %s1422_s25, %s1423_s7  ;;  %p1429_p1 = scmp.lt.s32.totalorder %s1427_s10, %s1423_s7 }
  0x19   : > { %326 = vadd.xlane.f32.xlu0 %v325_v1  ;;  %vm1604_vm8 = vmand %vm228_vm5, %vm232_vm6  ;;  %v1611_v45 = vsel %vm231_vm7, 0.35355338, %v1473_v44  ;;  %vm229_vm9 = vcmp.ge.s32.totalorder %v1599_v41, 16  ;;  %vm233_vm10 = vcmp.lt.s32.totalorder %v1599_v41, 24  ;;  %vm230_vm11 = vcmp.ge.s32.totalorder %v1599_v41, 24 }
  0x1a   : > { %v1364_v3 = vpop.eup %1363  ;;  %v1616_v46 = vsel %vm1604_vm8, 0.35355338, %v1473_v44  ;;  %vm234_vm12 = vcmp.lt.s32.totalorder %v1599_v41, 32  ;;  %vm1626_vm13 = vmand %vm229_vm9, %vm233_vm10  ;;  %v256_v59 = vand.u32 7, %v248_v58  ;;  %v249_v61 = vadd.s32 8, %v248_v58  ;;  %p1425_p12 = pnand %p1424_p11, %p1544_p5  ;;  %p1430_p2 = por %p1429_p1, %p1428_p0 }
  0x1b   : > { %v329_v4 = vmul.f32 32.0, %v1364_v3  ;;  %vm333_vm1 = vweird.f32 %v1364_v3  ;;  %381 = vmatpush.bf16.msra.mxu0 %v1583_v19  ;;  %vm1630_vm14 = vmand %vm230_vm11, %vm234_vm12  ;;  %v1637_v53 = vsel %vm1626_vm13, 0.35355338, %v1473_v44  ;;  %vm484_vm5 = vcmask 1043456  }
  0x1c   : > { %v1642_v54 = vsel %vm1630_vm14, 0.35355338, %v1473_v44  ;;  %vm1648_vm15 = vcmp.le.s32.totalorder %v1599_v41, %v256_v59  ;;  %v263_v2 = vand.u32 7, %v249_v61  ;;  %p1426_p13 = pneg %p1425_p12 }
  0x1d   : > { %v330_v5 = vsub.f32 1.0, %v329_v4  ;;  %v250_v4 = vadd.s32 16, %v248_v58 }
  0x1e   : > { %p1431_p3 = pnand %p1430_p2, %p1426_p13 }
  0x1f   : > { %v331_v6 = vmul.f32 %v1364_v3, %v330_v5 }
  0x21   : > { %v332_v7 = vadd.f32 %v1364_v3, %v331_v6 }
  0x23   : > { %v1563_v8 = vsel %vm333_vm1, %v1364_v3, %v332_v7  ;;  %vm429_vm1 = vcmask 64512  }
  0x8c   : > { %v327_v9 = vpop.xlane.xlu0 %326 }
  0x8d   : > { %v335_v10 = vmul.f32 %v1563_v8, %v327_v9  ;;  %v270_v9 = vand.u32 7, %v250_v4 }
  0x8f   : > { %v336_v11 = vsub.f32 %v1559_v0, %v335_v10 }
  0x91   : > { %v337_v12 = vmul.f32 %v336_v11, %v336_v11 }
  0x93   : > { %v338_v13 = vsel %vm324_vm0, %v337_v12, 0.0 }
  0x94   : > { %339 = vadd.xlane.f32.xlu0 %v338_v13 }
 0x107   : > { %v340_v20 = vpop.xlane.xlu0 %339 }
 0x108   : > { %v341_v21 = vmul.f32 %v340_v20, %v1563_v8 }
 0x10a   : > { %v342_v22 = vadd.f32 1e-05, %v341_v21 }
 0x10c   : > { %1365 = vrsqrt.f32 %v342_v22  ;;  %vm349_vm3 = vweird.f32 %v342_v22 }
 0x112   : > { %v1366_v23 = vpop.eup %1365 }
 0x113   : > { %v344_v24 = vmul.f32 %v1366_v23, %v342_v22  ;;  %vm350_vm2 = vweird.f32 %v1366_v23 }
 0x114   : > { %vm351_vm4 = vmor %vm349_vm3, %vm350_vm2  ;;  %vm1656_vm2 = vcmp.le.s32.totalorder %v1599_v41, %v263_v2  ;;  %vm1664_vm3 = vcmp.le.s32.totalorder %v1599_v41, %v270_v9 }
 0x115   : > { %v345_v25 = vmul.f32 %v1366_v23, %v344_v24 }
 0x117   : > { %v346_v26 = vmul.f32 0.5, %v345_v25 }
 0x119   : > { %v347_v27 = vsub.f32 1.5, %v346_v26 }
 0x11b   : > { %v348_v29 = vmul.f32 %v1366_v23, %v347_v27 }
 0x11d   : > { %v352_v31 = vsel %vm351_vm4, %v1366_v23, %v348_v29 }
 0x11e   : > { %v353_v32 = vmul.f32 %v352_v31, %v336_v11  ;;  %v251_v11 = vadd.s32 24, %v248_v58 }
 0x120   : > { %v355_v34 = vmul.f32 %v354_v30, %v353_v32  ;;  %v277_v15 = vand.u32 7, %v251_v11  ;;  %v1695_v11 = vsel %vm1604_vm8, 1.0, %v1473_v44 }
 0x122   : > { %v357_v35 = vadd.f32 %v356_v33, %v355_v34  ;;  %vm1672_vm4 = vcmp.le.s32.totalorder %v1599_v41, %v277_v15  ;;  %v1714_v41 = vsel %vm1630_vm14, 1.0, %v1473_v44 }
 0x124   : > { %v358_v36 = vpack.c.bf16 %v357_v35, %v357_v35 }
 0x126   : > { %1158 = vmatmul.msk.bf16.vlgmr.msra.gmra.mxu0 %vm324_vm0, %v358_v36 }
 0x1a3   : > { %v383_v37 = vpop.f32.mrf.mxu0 }
 0x1a4   : > { %v1595_v38 = vpack.c.bf16 %v383_v37, %v383_v37  ;;  %v387_v48 = vmul.f32 %v383_v37, %v1611_v45  ;;  %v388_v49 = vmul.f32 %v383_v37, %v1616_v46  ;;  %v389_v55 = vmul.f32 %v383_v37, %v1637_v53 }
 0x1a5   : > { %v390_v56 = vmul.f32 %v383_v37, %v1642_v54 }
 0x1a6   : > { %395 = vrot.lane.b32.xlu1 %v1595_v38, %s1472_s26  ;;  %v391_v50 = vpack.c.bf16 %v388_v49, %v387_v48 }
 0x1a7   : > { %v392_v57 = vpack.c.bf16 %v390_v56, %v389_v55 }
 0x1ab   : > { %v385_v39 = vpop.f32.mrf.mxu0 }
 0x218   : > { %v396_v43 = vpop.permute.xlu1 %395 }
 0x219   : > { %v404_v47 = vsel %vm324_vm0, %v396_v43, 0 }
 0x21a   : > { %413 = vmatpush.bf16.xpose.msra.mxu1 %v404_v47 }
 0x221   : > { %1159 = vmatmul.msk.bf16.vlgmr.msra.gmra.mxu1 %vm324_vm0, %v391_v50 }
 0x231   : > { %1160 = vmatmul.msk.bf16.gmra.mxu1 %vm324_vm0, %v392_v57 }
 0x29e   : > { %v415_v62 = vpop.f32.mrf.mxu1 }
 0x29f   : > { %v425_v63 = vsel %vm1648_vm15, %v415_v62, -1e+30 }
 0x2a0   : > { %v430_v1 = vsel %vm429_vm1, %v425_v63, -inf }
 0x2a1   : > { %431 = vmax.xlane.f32.xlu1 %v430_v1 }
 0x2a6   : > { %v417_v5 = vpop.f32.mrf.mxu1 }
 0x2a7   : > { %v426_v6 = vsel %vm1656_vm2, %v417_v5, -1e+30 }
 0x2a8   : > { %v433_v7 = vsel %vm429_vm1, %v426_v6, -inf }
 0x2a9   : > { %434 = vmax.xlane.f32.xlu2 %v433_v7 }
 0x2ae   : > { %v420_v12 = vpop.f32.mrf.mxu1 }
 0x2af   : > { %v427_v13 = vsel %vm1664_vm3, %v420_v12, -1e+30  ;;  %v1700_v12 = vsel %vm231_vm7, 1.0, %v1473_v44 }
 0x2b0   : > { %v436_v14 = vsel %vm429_vm1, %v427_v13, -inf }
 0x2b1   : > { %437 = vmax.xlane.f32.xlu2 %v436_v14 }
 0x2b6   : > { %v422_v18 = vpop.f32.mrf.mxu1 }
 0x2b7   : > { %v428_v20 = vsel %vm1672_vm4, %v422_v18, -1e+30 }
 0x2b8   : > { %v439_v21 = vsel %vm429_vm1, %v428_v20, -inf }
 0x2b9   : > { %440 = vmax.xlane.f32.xlu0 %v439_v21 }
 0x314   : > { %v432_v22 = vpop.xlane.xlu1 %431 }
 0x315   : > { %v442_v23 = vsub.f32 %v425_v63, %v432_v22 }
 0x317   : > { %v446_v24 = vmul.f32 1.442695, %v442_v23 }
 0x319   : > { %1367 = vpow2.f32 %v446_v24 }
 0x31c   : > { %v435_v25 = vpop.xlane.xlu2 %434 }
 0x31d   : > { %v443_v26 = vsub.f32 %v426_v6, %v435_v25 }
 0x31f   : > { %v1368_v27 = vpop.eup %1367  ;;  %v448_v29 = vmul.f32 1.442695, %v443_v26 }
 0x320   : > { %v454_v30 = vsel %vm429_vm1, %v1368_v27, 0.0 }
 0x321   : > { %1369 = vpow2.f32 %v448_v29  ;;  %455 = vadd.xlane.f32.xlu2 %v454_v30  ;;  %v519_v30 = vperm.slane %v1590_v28, 2 }
 0x324   : > { %v438_v31 = vpop.xlane.xlu2 %437 }
 0x325   : > { %v444_v32 = vsub.f32 %v427_v13, %v438_v31  ;;  %v1705_v13 = vsel %vm1626_vm13, 1.0, %v1473_v44 }
 0x327   : > { %v1370_v33 = vpop.eup %1369  ;;  %v450_v34 = vmul.f32 1.442695, %v444_v32 }
 0x328   : > { %v457_v35 = vsel %vm429_vm1, %v1370_v33, 0.0 }
 0x329   : > { %1371 = vpow2.f32 %v450_v34  ;;  %458 = vadd.xlane.f32.xlu0 %v457_v35 }
 0x32c   : > { %v441_v36 = vpop.xlane.xlu0 %440 }
 0x32d   : > { %v445_v37 = vsub.f32 %v428_v20, %v441_v36 }
 0x32f   : > { %v1372_v39 = vpop.eup %1371  ;;  %v452_v40 = vmul.f32 1.442695, %v445_v37 }
 0x330   : > { %v460_v43 = vsel %vm429_vm1, %v1372_v39, 0.0 }
 0x331   : > { %1373 = vpow2.f32 %v452_v40  ;;  %461 = vadd.xlane.f32.xlu0 %v460_v43  ;;  %v1295_v40 = vld [vmem:[%s1945_s1 + $0x14] sm:$0xf] }
 0x337   : > { %v1374_v47 = vpop.eup %1373 }
 0x338   : > { %v463_v48 = vsel %vm429_vm1, %v1374_v47, 0.0 }
 0x339   : > { %476 = vrot.lane.b32.xlu2 %v1595_v38, %s1474_s30  ;;  %464 = vadd.xlane.f32.xlu0 %v463_v48  ;;  %v1164_v48 = vld [vmem:[%s1945_s1 + $0x8] sm:$0xf0] }
 0x341   : > { %520 = vrot.lane.b32.xlu2 %v1583_v19, %s1475_s6 }
 0x34d   : > { %522 = vrot.lane.b32.xlu0 %v1574_v16, %s1475_s6 }
 0x394   : > { %v456_v49 = vpop.xlane.xlu2 %455 }
 0x395   : > { %1375 = vrcp.f32 %v456_v49 }
 0x39b   : > { %v1376_v57 = vpop.eup %1375 }
 0x39c   : > { %v477_v50 = vpop.permute.xlu2 %476  ;;  %v459_v55 = vpop.xlane.xlu0 %458  ;;  %v470_v59 = vmul.f32 %v1376_v57, %v1368_v27  ;;  %v1303_v57 = vld [vmem:[%s1946_s2 + $0x30] sm:$0xff] }
 0x39d   : > { %1377 = vrcp.f32 %v459_v55  ;;  %v486_v56 = vsel %vm484_vm5, %v477_v50, 0  ;;  %v1304_v50 = vld [vmem:[%s1946_s2 + $0x38] sm:$0xff] }
 0x39e   : > { %495 = vmatpush.bf16.msra.mxu2 %v486_v56 }
 0x3a2   : > { %646 = vmatpush.bf16.msrb.mxu2 %v1304_v50 }
 0x3a3   : > { %v1378_v58 = vpop.eup %1377 }
 0x3a4   : > { %v462_v38 = vpop.xlane.xlu0 %461  ;;  %v471_v61 = vmul.f32 %v1378_v58, %v1370_v33  ;;  %v521_v6 = vpop.permute.xlu2 %520 }
 0x3a5   : > { %1379 = vrcp.f32 %v462_v38  ;;  %v1302_v38 = vld [vmem:[%s1946_s2 + $0x28] sm:$0xff] }
 0x3a6   : > { %v474_v62 = vpack.c.bf16 %v471_v61, %v470_v59  ;;  %647 = vmatpush.bf16.msrb.mxu2 %v1303_v57  ;;  %v1301_v59 = vld [vmem:[%s1946_s2 + $0x20] sm:$0xff] }
 0x3a8   : > { %1161 = vmatmul.msk.bf16.vlgmr.msra.gmra.mxu2 %vm429_vm1, %v474_v62 }
 0x3aa   : > { %648 = vmatpush.bf16.msrb.mxu2 %v1302_v38 }
 0x3ab   : > { %v1380_v16 = vpop.eup %1379 }
 0x3ac   : > { %v465_v19 = vpop.xlane.xlu0 %464  ;;  %v472_v1 = vmul.f32 %v1380_v16, %v1372_v39 }
 0x3ad   : > { %1381 = vrcp.f32 %v465_v19  ;;  %v1300_v19 = vld [vmem:[%s1946_s2 + $0x18] sm:$0xff] }
 0x3ae   : > { %649 = vmatpush.bf16.msrb.mxu2 %v1301_v59  ;;  %v1799_v59 = vld [vmem:[%s1948_s4 + $0x8] sm:$0xff] }
 0x3b2   : > { %650 = vmatpush.bf16.msrb.mxu2 %v1300_v19 }
 0x3b3   : > { %v1382_v63 = vpop.eup %1381 }
 0x3b4   : > { %v473_v2 = vmul.f32 %v1382_v63, %v1374_v47  ;;  %v1293_v47 = vld [vmem:[%s1945_s1 + $0x4] sm:$0xf] }
 0x3b5   : > { %v1167_v49 = vor.u32 %v1293_v47, %v1164_v48 }
 0x3b6   : > { %v475_v4 = vpack.c.bf16 %v473_v2, %v472_v1  ;;  %v1299_v1 = vld [vmem:[%s1946_s2 + $0x10] sm:$0xff] }
 0x3b7   : > { %651 = vmatpush.bf16.msrb.mxu2 %v1299_v1 }
 0x3b8   : > { %1162 = vmatmul.msk.bf16.gmra.mxu2 %vm429_vm1, %v475_v4 }
 0x3bf   : > { %v523_v5 = vpop.permute.xlu0 %522 }
 0x3c0   : > { %535 = vmatpush.bf16.msra.mxu3 %v523_v5  ;;  %v565_v5 = vperm.slane %v1590_v28, 3 }
 0x3c4   : > { %536 = vmatpush.bf16.msra.mxu3 %v521_v6 }
 0x42b   : > { %v497_v7 = vpop.f32.mrf.mxu2 }
 0x42c   : > { %v507_v18 = vmul.f32 %v497_v7, %v1700_v12 }
 0x42e   : > { %v511_v21 = vsel %vm324_vm0, %v507_v18, 0.0 }
 0x433   : > { %v499_v9 = vpop.f32.mrf.mxu2 }
 0x434   : > { %v508_v15 = vmul.f32 %v499_v9, %v1695_v11  ;;  %v567_v9 = vperm.slane %v1590_v28, 4 }
 0x436   : > { %v512_v42 = vsel %vm324_vm0, %v508_v15, 0.0 }
 0x437   : > { %v513_v22 = vadd.f32 %v512_v42, %v511_v21  ;;  %v1297_v42 = vld [vmem:[%s1946_s2] sm:$0xff]  ;;  %v570_v21 = vperm.slane %v1590_v28, 5 }
 0x43b   : > { %v502_v14 = vpop.f32.mrf.mxu2 }
 0x43c   : > { %v509_v20 = vmul.f32 %v502_v14, %v1705_v13 }
 0x43e   : > { %v514_v51 = vsel %vm324_vm0, %v509_v20, 0.0  ;;  %v1298_v20 = vld [vmem:[%s1946_s2 + $0x8] sm:$0xff] }
 0x43f   : > { %v515_v25 = vadd.f32 %v514_v51, %v513_v22  ;;  %652 = vmatpush.bf16.msrb.mxu2 %v1298_v20 }
 0x443   : > { %v504_v23 = vpop.f32.mrf.mxu2  ;;  %653 = vmatpush.bf16.msrb.mxu2 %v1297_v42 }
 0x444   : > { %v510_v24 = vmul.f32 %v504_v23, %v1714_v41 }
 0x446   : > { %v516_v26 = vsel %vm324_vm0, %v510_v24, 0.0 }
 0x447   : > { %v517_v27 = vadd.f32 %v516_v26, %v515_v25  ;;  %v597_v26 = vperm.slane %v1590_v28, 6 }
 0x449   : > { %v518_v29 = vpack.c.bf16 %v517_v27, %v517_v27 }
 0x44b   : > { %1163 = vmatmul.msk.bf16.vlgmr.msra.gmra.mxu3 %vm324_vm0, %v518_v29 }
 0x4ce   : > { %v538_v52 = vpop.f32.mrf.mxu3 }
 0x4cf   : > { %v539_v44 = vadd.f32 %v538_v52, %v519_v30 }
 0x4d1   : > { %v1723_v31 = vadd.f32 %v539_v44, %v1559_v0  ;;  %v1168_v0 = vld [vmem:[%s1945_s1 + $0x18] sm:$0xf0] }
 0x4d2   : > { %v1171_v43 = vor.u32 %v1295_v40, %v1168_v0  ;;  %v1227_v40 = vld [vmem:[%s1945_s1 + $0x20] sm:$0xf]  ;;  %v1306_v0 = vld [vmem:[%s1945_s1 + $0x24] sm:$0xf0] }
 0x4d3   : > { %v543_v32 = vsel %vm324_vm0, %v1723_v31, 0.0 }
 0x4d4   : > { %544 = vadd.xlane.f32.xlu1 %v543_v32  ;;  %588 = vmatpush.bf16.msrb.mxu0 %v1171_v43  ;;  %v1792_v43 = vor.u32 %v1306_v0, %v1227_v40 }
 0x4d6   : > { %v540_v33 = vpop.f32.mrf.mxu3 }
 0x4d8   : > { %589 = vmatpush.bf16.msrb.mxu0 %v1167_v49 }
 0x547   : > { %v545_v34 = vpop.xlane.xlu1 %544 }
 0x548   : > { %v546_v35 = vmul.f32 %v545_v34, %v1563_v8 }
 0x54a   : > { %v547_v36 = vsub.f32 %v1723_v31, %v546_v35 }
 0x54c   : > { %v548_v37 = vmul.f32 %v547_v36, %v547_v36 }
 0x54e   : > { %v549_v39 = vsel %vm324_vm0, %v548_v37, 0.0  ;;  %v1231_v37 = vld [vmem:[%s1945_s1 + $0x30] sm:$0xf] }
 0x54f   : > { %550 = vadd.xlane.f32.xlu2 %v549_v39 }
 0x5c2   : > { %v551_v55 = vpop.xlane.xlu2 %550 }
 0x5c3   : > { %v552_v56 = vmul.f32 %v551_v55, %v1563_v8 }
 0x5c5   : > { %v553_v58 = vadd.f32 1e-05, %v552_v56 }
 0x5c7   : > { %1383 = vrsqrt.f32 %v553_v58  ;;  %vm560_vm7 = vweird.f32 %v553_v58 }
 0x5cd   : > { %v1384_v61 = vpop.eup %1383 }
 0x5ce   : > { %v555_v62 = vmul.f32 %v1384_v61, %v553_v58  ;;  %vm561_vm6 = vweird.f32 %v1384_v61 }
 0x5cf   : > { %vm562_vm8 = vmor %vm560_vm7, %vm561_vm6 }
 0x5d0   : > { %v556_v16 = vmul.f32 %v1384_v61, %v555_v62 }
 0x5d2   : > { %v557_v63 = vmul.f32 0.5, %v556_v16  ;;  %v706_v16 = vperm.slane %v1799_v59, 0 }
 0x5d4   : > { %v558_v2 = vsub.f32 1.5, %v557_v63 }
 0x5d6   : > { %v559_v4 = vmul.f32 %v1384_v61, %v558_v2 }
 0x5d8   : > { %v563_v6 = vsel %vm562_vm8, %v1384_v61, %v559_v4  ;;  %v704_v61 = vperm.slane %v1590_v28, 7 }
 0x5d9   : > { %v564_v7 = vmul.f32 %v563_v6, %v547_v36 }
 0x5db   : > { %v566_v14 = vmul.f32 %v565_v5, %v564_v7 }
 0x5dd   : > { %v568_v15 = vadd.f32 %v567_v9, %v566_v14 }
 0x5df   : > { %v569_v18 = vpack.c.bf16 %v568_v15, %v568_v15 }
 0x5e1   : > { %1172 = vmatmul.msk.bf16.vlgmr.msrb.gmra.mxu0 %vm324_vm0, %v569_v18 }
 0x65e   : > { %v591_v51 = vpop.f32.mrf.mxu0 }
 0x65f   : > { %v592_v22 = vadd.f32 %v591_v51, %v570_v21 }
 0x661   : > { %v595_v23 = vmax.f32 %v592_v22, 0.0 }
 0x663   : > { %v596_v24 = vpack.c.bf16 %v595_v23, %v595_v23 }
 0x665   : > { %654 = vmatmul.bf16.vlgmr.msrb.gmra.mxu2 %v596_v24 }
 0x666   : > { %v593_v25 = vpop.f32.mrf.mxu0 }
 0x6e8   : > { %v655_v27 = vpop.f32.mrf.mxu2 }
 0x6e9   : > { %v656_v29 = vadd.f32 %v655_v27, %v597_v26 }
 0x6eb   : > { %v1773_v30 = vadd.f32 %v656_v29, %v1723_v31  ;;  %v1308_v31 = vld [vmem:[%s1945_s1 + $0x34] sm:$0xf0] }
 0x6ec   : > { %v1232_v39 = vor.u32 %v1308_v31, %v1231_v37 }
 0x6ed   : > { %v682_v52 = vsel %vm324_vm0, %v1773_v30, 0.0 }
 0x6ee   : > { %683 = vadd.xlane.f32.xlu1 %v682_v52  ;;  %730 = vmatpush.bf16.msrb.mxu3 %v1232_v39 }
 0x6f0   : > { %v657_v44 = vpop.f32.mrf.mxu2 }
 0x6f2   : > { %731 = vmatpush.bf16.msrb.mxu3 %v1792_v43 }
 0x761   : > { %v684_v32 = vpop.xlane.xlu1 %683 }
 0x762   : > { %v685_v33 = vmul.f32 %v684_v32, %v1563_v8 }
 0x764   : > { %v686_v34 = vsub.f32 %v1773_v30, %v685_v33 }
 0x766   : > { %v687_v35 = vmul.f32 %v686_v34, %v686_v34 }
 0x768   : > { %v688_v36 = vsel %vm324_vm0, %v687_v35, 0.0 }
 0x769   : > { %689 = vadd.xlane.f32.xlu1 %v688_v36 }
 0x7dc   : > { %v690_v47 = vpop.xlane.xlu1 %689 }
 0x7dd   : > { %v691_v48 = vmul.f32 %v690_v47, %v1563_v8 }
 0x7df   : > { %v692_v49 = vadd.f32 1e-05, %v691_v48 }
 0x7e1   : > { %1385 = vrsqrt.f32 %v692_v49  ;;  %vm699_vm10 = vweird.f32 %v692_v49 }
 0x7e7   : > { %v1386_v50 = vpop.eup %1385 }
 0x7e8   : > { %v694_v55 = vmul.f32 %v1386_v50, %v692_v49  ;;  %vm700_vm9 = vweird.f32 %v1386_v50 }
 0x7e9   : > { %vm701_vm11 = vmor %vm699_vm10, %vm700_vm9 }
 0x7ea   : > { %v695_v56 = vmul.f32 %v1386_v50, %v694_v55 }
 0x7ec   : > { %v696_v57 = vmul.f32 0.5, %v695_v56 }
 0x7ee   : > { %v697_v58 = vsub.f32 1.5, %v696_v57 }
 0x7f0   : > { %v698_v38 = vmul.f32 %v1386_v50, %v697_v58 }
 0x7f2   : > { %v702_v62 = vsel %vm701_vm11, %v1386_v50, %v698_v38 }
 0x7f3   : > { %v703_v19 = vmul.f32 %v702_v62, %v686_v34 }
 0x7f5   : > { %v705_v63 = vmul.f32 %v704_v61, %v703_v19 }
 0x7f7   : > { %v707_v1 = vadd.f32 %v706_v16, %v705_v63 }
 0x7f9   : > { %v708_v2 = vpack.c.bf16 %v707_v1, %v707_v1 }
 0x7fb   : > { %1233 = vmatmul.msk.bf16.vlgmr.msrb.gmra.mxu3 %vm324_vm0, %v708_v2 }
 0x87e   : > { %v733_v4 = vpop.f32.mrf.mxu3 }
 0x87f   : > { %v743_v5 = vpack.c.bf16 %v733_v4, %v733_v4  ;;  %v737_v28 = vmul.f32 %v733_v4, %v1611_v45  ;;  %v738_v14 = vmul.f32 %v733_v4, %v1616_v46  ;;  %v739_v18 = vmul.f32 %v733_v4, %v1637_v53 }
 0x880   : > { %v740_v20 = vmul.f32 %v733_v4, %v1642_v54 }
 0x881   : > { %745 = vrot.lane.b32.xlu0 %v743_v5, %s1472_s26  ;;  %v741_v15 = vpack.c.bf16 %v738_v14, %v737_v28 }
 0x882   : > { %v742_v42 = vpack.c.bf16 %v740_v20, %v739_v18 }
 0x886   : > { %v735_v6 = vpop.f32.mrf.mxu3 }
 0x8f3   : > { %v746_v7 = vpop.permute.xlu0 %745 }
 0x8f4   : > { %v754_v9 = vsel %vm324_vm0, %v746_v7, 0 }
 0x8f5   : > { %763 = vmatpush.bf16.xpose.msra.mxu0 %v754_v9 }
 0x8fc   : > { %1234 = vmatmul.msk.bf16.vlgmr.msra.gmra.mxu0 %vm324_vm0, %v741_v15 }
 0x90c   : > { %1235 = vmatmul.msk.bf16.gmra.mxu0 %vm324_vm0, %v742_v42 }
 0x979   : > { %v765_v21 = vpop.f32.mrf.mxu0 }
 0x97a   : > { %v775_v51 = vsel %vm1648_vm15, %v765_v21, -1e+30 }
 0x97b   : > { %v779_v22 = vsel %vm429_vm1, %v775_v51, -inf }
 0x97c   : > { %780 = vmax.xlane.f32.xlu1 %v779_v22 }
 0x981   : > { %v767_v45 = vpop.f32.mrf.mxu0 }
 0x982   : > { %v776_v46 = vsel %vm1656_vm2, %v767_v45, -1e+30 }
 0x983   : > { %v782_v23 = vsel %vm429_vm1, %v776_v46, -inf }
 0x984   : > { %783 = vmax.xlane.f32.xlu0 %v782_v23 }
 0x989   : > { %v770_v53 = vpop.f32.mrf.mxu0 }
 0x98a   : > { %v777_v54 = vsel %vm1664_vm3, %v770_v53, -1e+30 }
 0x98b   : > { %v785_v24 = vsel %vm429_vm1, %v777_v54, -inf }
 0x98c   : > { %786 = vmax.xlane.f32.xlu1 %v785_v24 }
 0x991   : > { %v772_v25 = vpop.f32.mrf.mxu0 }
 0x992   : > { %v778_v60 = vsel %vm1672_vm4, %v772_v25, -1e+30 }
 0x993   : > { %v788_v26 = vsel %vm429_vm1, %v778_v60, -inf }
 0x994   : > { %789 = vmax.xlane.f32.xlu1 %v788_v26 }
 0x998   : > { %870 = vrot.lane.b32.xlu0 %v1232_v39, %s1475_s6 }
 0x9ef   : > { %v781_v3 = vpop.xlane.xlu1 %780 }
 0x9f0   : > { %v791_v27 = vsub.f32 %v775_v51, %v781_v3 }
 0x9f2   : > { %v795_v29 = vmul.f32 1.442695, %v791_v27 }
 0x9f4   : > { %1387 = vpow2.f32 %v795_v29 }
 0x9f7   : > { %v784_v52 = vpop.xlane.xlu0 %783 }
 0x9f8   : > { %v792_v44 = vsub.f32 %v776_v46, %v784_v52 }
 0x9fa   : > { %v1388_v10 = vpop.eup %1387  ;;  %v797_v32 = vmul.f32 1.442695, %v792_v44  ;;  %v1307_v44 = vld [vmem:[%s1945_s1 + $0x34] sm:$0xf] }
 0x9fb   : > { %v803_v33 = vsel %vm429_vm1, %v1388_v10, 0.0 }
 0x9fc   : > { %1389 = vpow2.f32 %v797_v32  ;;  %804 = vadd.xlane.f32.xlu2 %v803_v33  ;;  %v1305_v32 = vld [vmem:[%s1945_s1 + $0x24] sm:$0xf]  ;;  %v1239_v33 = vld [vmem:[%s1945_s1 + $0x28] sm:$0xf0] }
 0x9ff   : > { %v787_v34 = vpop.xlane.xlu1 %786 }
 0xa00   : > { %v793_v17 = vsub.f32 %v777_v54, %v787_v34  ;;  %v1242_v34 = vor.u32 %v1305_v32, %v1239_v33 }
 0xa02   : > { %v1390_v35 = vpop.eup %1389  ;;  %v799_v36 = vmul.f32 1.442695, %v793_v17  ;;  %v1316_v17 = vld [vmem:[%s1946_s2 + $0x78] sm:$0xff] }
 0xa03   : > { %v806_v37 = vsel %vm429_vm1, %v1390_v35, 0.0  ;;  %994 = vmatpush.bf16.msrb.mxu0 %v1316_v17 }
 0xa04   : > { %1391 = vpow2.f32 %v799_v36  ;;  %807 = vadd.xlane.f32.xlu1 %v806_v37  ;;  %v1315_v37 = vld [vmem:[%s1946_s2 + $0x70] sm:$0xff] }
 0xa07   : > { %v790_v31 = vpop.xlane.xlu1 %789  ;;  %995 = vmatpush.bf16.msrb.mxu0 %v1315_v37 }
 0xa08   : > { %v794_v39 = vsub.f32 %v778_v60, %v790_v31 }
 0xa0a   : > { %v1392_v40 = vpop.eup %1391  ;;  %v801_v0 = vmul.f32 1.442695, %v794_v39  ;;  %v871_v6 = vpop.permute.xlu0 %870  ;;  %v1314_v39 = vld [vmem:[%s1946_s2 + $0x68] sm:$0xff] }
 0xa0b   : > { %v809_v47 = vsel %vm429_vm1, %v1392_v40, 0.0  ;;  %883 = vmatpush.bf16.msra.mxu3 %v871_v6  ;;  %996 = vmatpush.bf16.msrb.mxu0 %v1314_v39 }
 0xa0c   : > { %1393 = vpow2.f32 %v801_v0  ;;  %810 = vadd.xlane.f32.xlu1 %v809_v47 }
 0xa12   : > { %v1394_v48 = vpop.eup %1393 }
 0xa13   : > { %v812_v49 = vsel %vm429_vm1, %v1394_v48, 0.0 }
 0xa14   : > { %825 = vrot.lane.b32.xlu2 %v743_v5, %s1474_s30  ;;  %813 = vadd.xlane.f32.xlu1 %v812_v49 }
 0xa2d   : > { %868 = vrot.lane.b32.xlu1 %v1792_v43, %s1475_s6 }
 0xa6f   : > { %v805_v50 = vpop.xlane.xlu2 %804 }
 0xa70   : > { %1395 = vrcp.f32 %v805_v50 }
 0xa76   : > { %v1396_v58 = vpop.eup %1395 }
 0xa77   : > { %v826_v55 = vpop.permute.xlu2 %825  ;;  %v808_v56 = vpop.xlane.xlu1 %807  ;;  %v819_v61 = vmul.f32 %v1396_v58, %v1388_v10  ;;  %v913_v58 = vperm.slane %v1799_v59, 2 }
 0xa78   : > { %1397 = vrcp.f32 %v808_v56  ;;  %v834_v57 = vsel %vm484_vm5, %v826_v55, 0  ;;  %v1311_v55 = vld [vmem:[%s1946_s2 + $0x50] sm:$0xff] }
 0xa79   : > { %843 = vmatpush.bf16.msrb.mxu1 %v834_v57 }
 0xa7e   : > { %v1398_v38 = vpop.eup %1397 }
 0xa7f   : > { %v820_v62 = vmul.f32 %v1398_v38, %v1390_v35  ;;  %v811_v19 = vpop.xlane.xlu1 %810 }
 0xa80   : > { %1399 = vrcp.f32 %v811_v19 }
 0xa81   : > { %v823_v16 = vpack.c.bf16 %v820_v62, %v819_v61  ;;  %v915_v62 = vperm.slane %v1799_v59, 3 }
 0xa83   : > { %1236 = vmatmul.msk.bf16.vlgmr.msrb.gmra.mxu1 %vm429_vm1, %v823_v16 }
 0xa86   : > { %v1400_v43 = vpop.eup %1399 }
 0xa87   : > { %v814_v63 = vpop.xlane.xlu1 %813  ;;  %v821_v2 = vmul.f32 %v1400_v43, %v1392_v40  ;;  %v1313_v40 = vld [vmem:[%s1946_s2 + $0x60] sm:$0xff]  ;;  %v1310_v43 = vld [vmem:[%s1946_s2 + $0x48] sm:$0xff] }
 0xa88   : > { %1401 = vrcp.f32 %v814_v63  ;;  %997 = vmatpush.bf16.msrb.mxu0 %v1313_v40 }
 0xa8e   : > { %v1402_v1 = vpop.eup %1401 }
 0xa8f   : > { %v822_v4 = vmul.f32 %v1402_v1, %v1394_v48  ;;  %v1312_v48 = vld [vmem:[%s1946_s2 + $0x58] sm:$0xff]  ;;  %v1309_v1 = vld [vmem:[%s1946_s2 + $0x40] sm:$0xff] }
 0xa90   : > { %998 = vmatpush.bf16.msrb.mxu0 %v1312_v48 }
 0xa91   : > { %v824_v5 = vpack.c.bf16 %v822_v4, %v821_v2  ;;  %v918_v2 = vperm.slane %v1799_v59, 4 }
 0xa93   : > { %1237 = vmatmul.msk.bf16.gmra.mxu1 %vm429_vm1, %v824_v5 }
 0xa94   : > { %999 = vmatpush.bf16.msrb.mxu0 %v1311_v55 }
 0xa98   : > { %1000 = vmatpush.bf16.msrb.mxu0 %v1310_v43 }
 0xa9c   : > { %1001 = vmatpush.bf16.msrb.mxu0 %v1309_v1 }
 0xa9f   : > { %v869_v7 = vpop.permute.xlu1 %868 }
 0xaa0   : > { %884 = vmatpush.bf16.msra.mxu3 %v869_v7 }
 0xb00   : > { %v845_v9 = vpop.f32.mrf.mxu1 }
 0xb01   : > { %v855_v18 = vmul.f32 %v845_v9, %v1700_v12 }
 0xb03   : > { %v859_v21 = vsel %vm324_vm0, %v855_v18, 0.0 }
 0xb08   : > { %v847_v28 = vpop.f32.mrf.mxu1 }
 0xb09   : > { %v856_v15 = vmul.f32 %v847_v28, %v1695_v11  ;;  %v867_v11 = vperm.slane %v1799_v59, 1  ;;  %v945_v28 = vperm.slane %v1799_v59, 5 }
 0xb0b   : > { %v860_v42 = vsel %vm324_vm0, %v856_v15, 0.0 }
 0xb0c   : > { %v861_v22 = vadd.f32 %v860_v42, %v859_v21 }
 0xb10   : > { %v850_v14 = vpop.f32.mrf.mxu1 }
 0xb11   : > { %v857_v20 = vmul.f32 %v850_v14, %v1705_v13 }
 0xb13   : > { %v862_v51 = vsel %vm324_vm0, %v857_v20, 0.0 }
 0xb14   : > { %v863_v23 = vadd.f32 %v862_v51, %v861_v22 }
 0xb18   : > { %v852_v45 = vpop.f32.mrf.mxu1 }
 0xb19   : > { %v858_v46 = vmul.f32 %v852_v45, %v1714_v41 }
 0xb1b   : > { %v864_v53 = vsel %vm324_vm0, %v858_v46, 0.0 }
 0xb1c   : > { %v865_v54 = vadd.f32 %v864_v53, %v863_v23  ;;  %v1318_v23 = vld [vmem:[%s1947_s3 + $0x8] sm:$0xff]  ;;  %v1317_v53 = vld [vmem:[%s1947_s3] sm:$0xff] }
 0xb1d   : > { %1061 = vmatpush.bf16.msrb.mxu3 %v1318_v23 }
 0xb1e   : > { %v866_v24 = vpack.c.bf16 %v865_v54, %v865_v54 }
 0xb20   : > { %1238 = vmatmul.msk.bf16.vlgmr.msra.gmra.mxu3 %vm324_vm0, %v866_v24 }
 0xb21   : > { %1062 = vmatpush.bf16.msrb.mxu3 %v1317_v53 }
 0xba3   : > { %v886_v12 = vpop.f32.mrf.mxu3 }
 0xba4   : > { %v887_v13 = vadd.f32 %v886_v12, %v867_v11 }
 0xba6   : > { %v1846_v25 = vadd.f32 %v887_v13, %v1773_v30  ;;  %v1243_v30 = vld [vmem:[%s1945_s1 + $0x38] sm:$0xf0] }
 0xba7   : > { %v1246_v10 = vor.u32 %v1307_v44, %v1243_v30 }
 0xba8   : > { %v891_v60 = vsel %vm324_vm0, %v1846_v25, 0.0 }
 0xba9   : > { %892 = vadd.xlane.f32.xlu2 %v891_v60  ;;  %936 = vmatpush.bf16.msra.mxu2 %v1246_v10  ;;  %v224_v10 = vld [vmem:[%s1948_s4 + $0x10] sm:$0xff] }
 0xbaa   : > { %v1039_v32 = vperm.slane %v224_v10, 0 }
 0xbab   : > { %v888_v26 = vpop.f32.mrf.mxu3 }
 0xbad   : > { %937 = vmatpush.bf16.msra.mxu2 %v1242_v34 }
 0xc1c   : > { %v893_v41 = vpop.xlane.xlu2 %892 }
 0xc1d   : > { %v894_v3 = vmul.f32 %v893_v41, %v1563_v8 }
 0xc1f   : > { %v895_v27 = vsub.f32 %v1846_v25, %v894_v3  ;;  %v1030_v3 = vperm.slane %v1799_v59, 6 }
 0xc21   : > { %v896_v29 = vmul.f32 %v895_v27, %v895_v27 }
 0xc23   : > { %v897_v52 = vsel %vm324_vm0, %v896_v29, 0.0 }
 0xc24   : > { %898 = vadd.xlane.f32.xlu0 %v897_v52  ;;  %v1032_v52 = vperm.slane %v1799_v59, 7 }
 0xc97   : > { %v899_v35 = vpop.xlane.xlu0 %898 }
 0xc98   : > { %v900_v36 = vmul.f32 %v899_v35, %v1563_v8 }
 0xc9a   : > { %v901_v31 = vadd.f32 1e-05, %v900_v36 }
 0xc9c   : > { %1403 = vrsqrt.f32 %v901_v31  ;;  %vm908_vm13 = vweird.f32 %v901_v31 }
 0xca2   : > { %v1404_v0 = vpop.eup %1403 }
 0xca3   : > { %v903_v47 = vmul.f32 %v1404_v0, %v901_v31  ;;  %vm909_vm12 = vweird.f32 %v1404_v0 }
 0xca4   : > { %vm910_vm14 = vmor %vm908_vm13, %vm909_vm12 }
 0xca5   : > { %v904_v49 = vmul.f32 %v1404_v0, %v903_v47 }
 0xca7   : > { %v905_v50 = vmul.f32 0.5, %v904_v49 }
 0xca9   : > { %v906_v56 = vsub.f32 1.5, %v905_v50 }
 0xcab   : > { %v907_v57 = vmul.f32 %v1404_v0, %v906_v56 }
 0xcad   : > { %v911_v38 = vsel %vm910_vm14, %v1404_v0, %v907_v57 }
 0xcae   : > { %v912_v61 = vmul.f32 %v911_v38, %v895_v27 }
 0xcb0   : > { %v914_v19 = vmul.f32 %v913_v58, %v912_v61 }
 0xcb2   : > { %v916_v16 = vadd.f32 %v915_v62, %v914_v19 }
 0xcb4   : > { %v917_v63 = vpack.c.bf16 %v916_v16, %v916_v16 }
 0xcb6   : > { %1247 = vmatmul.msk.bf16.vlgmr.msra.gmra.mxu2 %vm324_vm0, %v917_v63 }
 0xd39   : > { %v939_v4 = vpop.f32.mrf.mxu2 }
 0xd3a   : > { %v940_v5 = vadd.f32 %v939_v4, %v918_v2 }
 0xd3c   : > { %v943_v6 = vmax.f32 %v940_v5, 0.0 }
 0xd3e   : > { %v944_v7 = vpack.c.bf16 %v943_v6, %v943_v6 }
 0xd40   : > { %1002 = vmatmul.bf16.vlgmr.msrb.gmra.mxu0 %v944_v7 }
 0xd41   : > { %v941_v9 = vpop.f32.mrf.mxu2 }
 0xdbd   : > { %v1003_v14 = vpop.f32.mrf.mxu0 }
 0xdbe   : > { %v1004_v15 = vadd.f32 %v1003_v14, %v945_v28 }
 0xdc0   : > { %v1007_v18 = vadd.f32 %v1004_v15, %v1846_v25 }
 0xdc2   : > { %v1008_v20 = vsel %vm324_vm0, %v1007_v18, 0.0 }
 0xdc3   : > { %1009 = vadd.xlane.f32.xlu1 %v1008_v20 }
 0xdc5   : > { %v1005_v42 = vpop.f32.mrf.mxu0 }
 0xe36   : > { %v1010_v21 = vpop.xlane.xlu1 %1009 }
 0xe37   : > { %v1011_v51 = vmul.f32 %v1010_v21, %v1563_v8 }
 0xe39   : > { %v1012_v22 = vsub.f32 %v1007_v18, %v1011_v51 }
 0xe3b   : > { %v1013_v45 = vmul.f32 %v1012_v22, %v1012_v22 }
 0xe3d   : > { %v1014_v46 = vsel %vm324_vm0, %v1013_v45, 0.0 }
 0xe3e   : > { %1015 = vadd.xlane.f32.xlu2 %v1014_v46 }
 0xeb1   : > { %v1016_v54 = vpop.xlane.xlu2 %1015 }
 0xeb2   : > { %v1017_v24 = vmul.f32 %v1016_v54, %v1563_v8 }
 0xeb4   : > { %v1018_v11 = vadd.f32 1e-05, %v1017_v24 }
 0xeb6   : > { %1405 = vrsqrt.f32 %v1018_v11  ;;  %vm1025_vm1 = vweird.f32 %v1018_v11 }
 0xebc   : > { %v1406_v12 = vpop.eup %1405 }
 0xebd   : > { %v1020_v13 = vmul.f32 %v1406_v12, %v1018_v11  ;;  %vm1026_vm15 = vweird.f32 %v1406_v12 }
 0xebe   : > { %vm1027_vm2 = vmor %vm1025_vm1, %vm1026_vm15 }
 0xebf   : > { %v1021_v25 = vmul.f32 %v1406_v12, %v1020_v13 }
 0xec1   : > { %v1022_v60 = vmul.f32 0.5, %v1021_v25 }
 0xec3   : > { %v1023_v26 = vsub.f32 1.5, %v1022_v60 }
 0xec5   : > { %v1024_v41 = vmul.f32 %v1406_v12, %v1023_v26 }
 0xec7   : > { %v1028_v27 = vsel %vm1027_vm2, %v1406_v12, %v1024_v41 }
 0xec8   : > { %v1029_v29 = vmul.f32 %v1028_v27, %v1012_v22 }
 0xeca   : > { %v1031_v8 = vmul.f32 %v1030_v3, %v1029_v29 }
 0xecc   : > { %v1033_v44 = vadd.f32 %v1032_v52, %v1031_v8 }
 0xece   : > { %v1034_v30 = vpack.c.bf16 %v1033_v44, %v1033_v44 }
 0xed0   : > { %1288 = vmatmul.msk.bf16.vlgmr.msrb.gmra.mxu3 %vm324_vm0, %v1034_v30 }
 0xf53   : > { %v1064_v59 = vpop.f32.mrf.mxu3 }
 0xf54   : > { %v1065_v33 = vadd.f32 %v1064_v59, %v1039_v32 }
 0xf56   : > { %1068 = vst [vmem:[%s215_s16] sm:$0xff] %v1065_v33 }
 0xf57   : > { %1434 = shalt.err (!%p1431_p3)
}
 0xf58   : > { %1319 = dma.vmem_to_hbm [thread:$0]  (%p1544_p5), %s1083_s17, 128, %s1085_s23, %s1070_s22  }
 0xf5b   : > { %v1066_v34 = vpop.f32.mrf.mxu3 }
 0xf5c PF: > { %p1325_p4 = scmp.ge.s32.totalorder %s1469_s21, 2  ;;  %s1096_s11 = sand.u32 1, %s1457_s18  }
 0xf5d   : > { %s1097_s14 = scalar_lea.sflag [#allocation3], %s1096_s11 }
 0xf5e   : > { %p1322_p7 = pnand %p1325_p4, %p1548_p6 }
 0xf60   : > { %p1323_p8 = pneg %p1322_p7 }
 0xf62   : > { %1452 = dma.done.wait (%p1323_p8), %s1097_s14, 128  }
 0xf63   : > { %1454 = vsyncadd (%p1323_p8), %s1097_s14, 4294967168  ;;  %p15_p9 = scmp.ge.s32.totalorder %s1531_s24, 4   ;;  %s1966_s18 = smov %s1461_s19 }
 0xf64   : > { %s1967_s19 = smov %s1465_s20  ;;  %s1968_s20 = smov %s1542_s27 }
 0xf65   : > { %s1969_s21 = smov %s1531_s24  ;;  %17 = sbr.rel (!%p15_p9) target bundleno = 3 (0x3), region = 77 }
 0xf6a   :  { %1103 = vsyncpa [#allocation3], 1 }
 0xf6b   :  { %1105 = vsyncpa [#allocation3 + $0x1], 1 }

</bundles_post_ra>
